<compile_context>
chip_gen: v6e
topology: v6e:2x2x1
jax: 0.10.0
libtpu: 0.0.40
codegen_flags: <defaults>
</compile_context>

<pallas_src>
import functools

import jax
import jax.numpy as jnp
from jax import lax
from jax.experimental import pallas as pl
from jax.experimental.pallas import tpu as pltpu


_MM_DTYPE = jnp.bfloat16                 # matmul operand dtype (f32 accumulation)
# 32 MiB scoped VMEM is ample at these sizes and safe on every TPU generation.
# TODO(synk): for large N raise this on v5e/v6e (128 MiB physical) and add a
# node-tile grid axis on v7x (64 MiB physical) instead of full-N blocks.
_VMEM_LIMIT = 32 * 1024 * 1024


# ---------------------------------------------------------------------------
# Fused Pallas kernel (whole forward for one batch element)
# ---------------------------------------------------------------------------

def _fused_kernel(x_ref, idx_ref, *refs, layer_kinds, n_nbr, n_et,
                  common_hop, global_hop, cdt):
    """graph_embedding_v2 forward for one batch element, fully fused in VMEM.

    Stages:
      1. one stacked (K*N, N) one-hot -> single MXU gather of the raw points
      2. etype_net: stacked edge features + 2-layer MLP + softmax(E) (one pass)
      3. etype-weighted adjacency, stacked (E*N, N) bf16, built ONCE
      4. embedding stack (dim_change / res_gnn): aggregation per layer is a
         single (E*N, N) @ (N, C) MXU matmul against the precomputed adjacency
      5. global-max concat + global gnn_op; result stored lane-dense (Cout, N)
    """
    o_ref = refs[-1]
    wit = iter(refs[:-1])
    nxt = lambda: next(wit)

    x = x_ref[0]                               # (N, C0) f32
    n = x.shape[0]
    idx_col = idx_ref[0]                       # (K*N, 1) int32, row k*N + node
    kn = n_nbr * n
    inv_k = 1.0 / n_nbr

    # ---- 1. stacked one-hot gather matrix (row k*N+n selects idx[n, k]) -----
    iota = lax.broadcasted_iota(jnp.int32, (kn, n), 1)
    oh_f = jnp.where(iota == idx_col, 1.0, 0.0)          # (K*N, N) f32
    oh_b = oh_f.astype(cdt)                              # 0/1 exact in bf16

    # ---- 2. etype_net: single stacked gather + 2-layer MLP + softmax --------
    w1 = nxt()[...].astype(cdt); b1 = nxt()[...]
    w2 = nxt()[...].astype(cdt); b2 = nxt()[...]
    nbr0 = jnp.dot(oh_b, x.astype(cdt),
                   preferred_element_type=jnp.float32)   # (K*N, C0)
    center = jnp.concatenate([x] * n_nbr, axis=0)        # (K*N, C0)
    # TODO(synk): edge feature assumed to be cat([center, neighbor - center]).
    ef = jnp.concatenate([center, nbr0 - center], axis=-1)          # (K*N, 2*C0)
    # TODO(synk): contraction depth 2*C0 is tiny; this stage is VPU/launch bound,
    # kept small on purpose rather than padded to feed the MXU efficiently.
    h = jnp.maximum(
        jnp.dot(ef.astype(cdt), w1, preferred_element_type=jnp.float32) + b1, 0.0)
    lg = jnp.dot(h.astype(cdt), w2, preferred_element_type=jnp.float32) + b2
    lg = lg - jnp.max(lg, axis=-1, keepdims=True)
    p = jnp.exp(lg)
    et = p / jnp.sum(p, axis=-1, keepdims=True)          # (K*N, E) softmax over E

    # ---- 3. etype-weighted adjacency (built once, reused by every layer) ----
    a_blocks = []
    for e in range(n_et):
        et_e = et[:, e:e + 1]                            # (K*N, 1)
        acc = jnp.zeros((n, n), jnp.float32)
        for k in range(n_nbr):
            s = k * n
            acc = acc + oh_f[s:s + n] * et_e[s:s + n]    # (N, N) fused mul-add
        a_blocks.append(acc)
    a_st = jnp.concatenate(a_blocks, axis=0).astype(cdt)  # (E*N, N), row e*N+node

    def aggregate(feat_b):
        # feat_b: (N, C) bf16 -> (N, E*C) f32, etype-weighted mean over K,
        # via ONE stacked MXU matmul against the precomputed adjacency.
        agg_st = jnp.dot(a_st, feat_b, preferred_element_type=jnp.float32)  # (E*N, C)
        return jnp.concatenate(
            [agg_st[e * n:(e + 1) * n] for e in range(n_et)], axis=-1) * inv_k

    # ---- 4. embedding stack --------------------------------------------------
    # TODO(synk): parameters are shared over anum and the anum inputs are pure
    # broadcasts, so the stack runs once per batch; if the real res_gnn_layer /
    # dim_change_conv carry per-anum weights, add an anum grid axis instead.
    nf = x
    for kind in layer_kinds:
        if kind == "dim_change":
            wdc = nxt()[...].astype(cdt); bdc = nxt()[...]
            nf = jnp.maximum(
                jnp.dot(nf.astype(cdt), wdc,
                        preferred_element_type=jnp.float32) + bdc, 0.0)
        else:                                             # res_gnn_layer
            ws = nxt()[...].astype(cdt); wa = nxt()[...].astype(cdt); b = nxt()[...]
            nfb = nf.astype(cdt)
            y = jnp.dot(nfb, ws, preferred_element_type=jnp.float32)
            if common_hop:
                agg = aggregate(nfb)
                y = y + jnp.dot(agg.astype(cdt), wa,
                                preferred_element_type=jnp.float32)
            nf = jnp.maximum(y + b, 0.0) + nf             # residual

    # ---- 5. global max + concat + global gnn_op (no residual) ---------------
    g_ws = nxt()[...].astype(cdt); g_wa = nxt()[...].astype(cdt); g_b = nxt()[...]
    c = nf.shape[-1]
    g = jnp.max(nf, axis=0, keepdims=True)                              # (1, C)
    xf = jnp.concatenate([jnp.broadcast_to(g, (n, c)), nf], axis=-1)    # (N, 2C)
    xfb = xf.astype(cdt)
    y = jnp.dot(xfb, g_ws, preferred_element_type=jnp.float32)
    if global_hop:
        agg = aggregate(xfb)
        y = y + jnp.dot(agg.astype(cdt), g_wa, preferred_element_type=jnp.float32)
    y = jnp.maximum(y + g_b, 0.0)                                       # (N, Cout)

    # lane-dense store: channels on sublanes, nodes on lanes.
    o_ref[0] = jnp.transpose(y).astype(o_ref.dtype)                     # (Cout, N)


# ---------------------------------------------------------------------------
# Parameters & forward (host-side glue is only transposes / broadcasts)
# ---------------------------------------------------------------------------

def init_params(key, hidden_size, etypes, et_hidden=16):
    e_in, E = etypes
    keys = iter(jax.random.split(key, 4 + 4 * len(hidden_size)))

    def mk(shape, fan_in):
        return jax.random.normal(next(keys), shape, jnp.float32) / jnp.sqrt(fan_in)

    params = {
        # TODO(synk): exact etype_net architecture not given; reconstructed as
        # conv1x1(e_in -> et_hidden) -> relu -> conv1x1(et_hidden -> E) -> softmax.
        "et_w1": mk((e_in, et_hidden), e_in),
        "et_b1": jnp.zeros((1, et_hidden), jnp.float32),
        "et_w2": mk((et_hidden, E), et_hidden),
        "et_b2": jnp.zeros((1, E), jnp.float32),
        "layers": [],
    }
    for l in range(len(hidden_size) - 1):
        nin, nout = hidden_size[l], hidden_size[l + 1]
        if nin == nout:
            params["layers"].append({          # res_gnn_layer
                "kind": "res_gnn",
                "ws": mk((nin, nout), nin),
                "wa": mk((E * nin, nout), E * nin),
                "b": jnp.zeros((1, nout), jnp.float32),
            })
        else:
            params["layers"].append({          # dim_change_conv
                "kind": "dim_change",
                "w": mk((nin, nout), nin),
                "b": jnp.zeros((1, nout), jnp.float32),
            })
    nlast = hidden_size[-1]
    params["g_ws"] = mk((2 * nlast, nlast), 2 * nlast)
    params["g_wa"] = mk((E * 2 * nlast, nlast), E * 2 * nlast)
    params["g_b"] = jnp.zeros((1, nlast), jnp.float32)
    return params


def graph_embedding_v2_forward(params, pts, nn_idx, *, anum, etypes,
                               common_hop=True, global_hop=True):
    """pts: (B, C0, N) f32 (PyTorch layout); nn_idx: (B, N, K) int32.
       returns (B, anum, hidden_size[-1], N, 1) matching the PyTorch module."""
    B, C0, N = pts.shape
    E = etypes[1]
    K = nn_idx.shape[-1]
    Cout = params["g_ws"].shape[1]

    x = jnp.transpose(pts, (0, 2, 1)).astype(jnp.float32)          # (B, N, C0)
    # Row k*N + n selects idx[n, k]; pre-laid-out as a column so the kernel needs
    # no in-kernel lane->sublane reshuffle of the index tensor.
    idx_col = jnp.transpose(nn_idx.astype(jnp.int32), (0, 2, 1)).reshape(B, K * N, 1)

    layer_kinds = tuple(layer["kind"] for layer in params["layers"])
    weights = [params["et_w1"], params["et_b1"], params["et_w2"], params["et_b2"]]
    for layer in params["layers"]:
        if layer["kind"] == "dim_change":
            weights += [layer["w"], layer["b"]]
        else:
            weights += [layer["ws"], layer["wa"], layer["b"]]
    weights += [params["g_ws"], params["g_wa"], params["g_b"]]

    w_specs = [pl.BlockSpec(w.shape, lambda b: (0, 0)) for w in weights]

    kernel = functools.partial(
        _fused_kernel, layer_kinds=layer_kinds, n_nbr=K, n_et=E,
        common_hop=common_hop, global_hop=global_hop, cdt=_MM_DTYPE)

    out = pl.pallas_call(
        kernel,
        out_shape=jax.ShapeDtypeStruct((B, Cout, N), jnp.float32),
        grid=(B,),
        in_specs=[
            pl.BlockSpec((1, N, C0), lambda b: (b, 0, 0)),
            pl.BlockSpec((1, K * N, 1), lambda b: (b, 0, 0)),
        ] + w_specs,
        out_specs=pl.BlockSpec((1, Cout, N), lambda b: (b, 0, 0)),
        compiler_params=pltpu.CompilerParams(
            dimension_semantics=("parallel",), vmem_limit_bytes=_VMEM_LIMIT),
    )(x, idx_col, *weights)                                        # (B, Cout, N)

    # anum dedup: shared parameters + broadcast inputs => identical per-a slices.
    out = jnp.broadcast_to(out[:, None], (B, anum, Cout, N))[..., None]
    return out                                                     # (B, A, C, N, 1)


# ---------------------------------------------------------------------------

if __name__ == "__main__":
    key = jax.random.PRNGKey(0)
    B, C0, N, K, anum = 2, 3, 16, 8, 2
    hidden_size = [C0, 32, 32]          # dim_change_conv(3->32), res_gnn_layer(32->32)
    E = 4
    etypes = (2 * C0, E)                # (edge-feature dim, num edge types)

    kp, kx, ki = jax.random.split(key, 3)
    params = init_params(kp, hidden_size, etypes, et_hidden=16)
    pts = jax.random.normal(kx, (B, C0, N), jnp.float32)
    nn_idx = jax.random.randint(ki, (B, N, K), 0, N, dtype=jnp.int32)

    out = graph_embedding_v2_forward(params, pts, nn_idx, anum=anum, etypes=etypes)
    out = jax.block_until_ready(out)
    assert out.shape == (B, anum, hidden_size[-1], N, 1), out.shape
    assert out.dtype == jnp.float32
    assert bool(jnp.all(jnp.isfinite(out)))
    print("KERNEL_OK")
</pallas_src>

<mosaic_0001>
module attributes {stable_mosaic.version = 11 : i64} {
  func.func @_fused_kernel(%arg0: i32, %arg1: memref<1x16x3xf32, #tpu.memory_space<vmem>>, %arg2: memref<1x128x1xi32, #tpu.memory_space<vmem>>, %arg3: memref<6x16xf32, #tpu.memory_space<vmem>>, %arg4: memref<1x16xf32, #tpu.memory_space<vmem>>, %arg5: memref<16x4xf32, #tpu.memory_space<vmem>>, %arg6: memref<1x4xf32, #tpu.memory_space<vmem>>, %arg7: memref<3x32xf32, #tpu.memory_space<vmem>>, %arg8: memref<1x32xf32, #tpu.memory_space<vmem>>, %arg9: memref<32x32xf32, #tpu.memory_space<vmem>>, %arg10: memref<128x32xf32, #tpu.memory_space<vmem>>, %arg11: memref<1x32xf32, #tpu.memory_space<vmem>>, %arg12: memref<64x32xf32, #tpu.memory_space<vmem>>, %arg13: memref<256x32xf32, #tpu.memory_space<vmem>>, %arg14: memref<1x32xf32, #tpu.memory_space<vmem>>, %arg15: memref<1x32x16xf32, #tpu.memory_space<vmem>>) attributes {dimension_semantics = [#tpu.dimension_semantics<parallel>], iteration_bounds = array<i64: 2>, scalar_prefetch = 0 : i64, scratch_operands = 0 : i64, tpu.core_type = #tpu.core_type<tc>, window_params = [{transform_indices = @transform_0, window_bounds = array<i64: 1, 16, 3>}, {transform_indices = @transform_1, window_bounds = array<i64: 1, 128, 1>}, {pipeline_mode = #tpu.pipeline_mode<synchronous>, transform_indices = @transform_2, window_bounds = array<i64: 6, 16>}, {pipeline_mode = #tpu.pipeline_mode<synchronous>, transform_indices = @transform_3, window_bounds = array<i64: 1, 16>}, {pipeline_mode = #tpu.pipeline_mode<synchronous>, transform_indices = @transform_4, window_bounds = array<i64: 16, 4>}, {pipeline_mode = #tpu.pipeline_mode<synchronous>, transform_indices = @transform_5, window_bounds = array<i64: 1, 4>}, {pipeline_mode = #tpu.pipeline_mode<synchronous>, transform_indices = @transform_6, window_bounds = array<i64: 3, 32>}, {pipeline_mode = #tpu.pipeline_mode<synchronous>, transform_indices = @transform_7, window_bounds = array<i64: 1, 32>}, {pipeline_mode = #tpu.pipeline_mode<synchronous>, transform_indices = @transform_8, window_bounds = array<i64: 32, 32>}, {pipeline_mode = #tpu.pipeline_mode<synchronous>, transform_indices = @transform_9, window_bounds = array<i64: 128, 32>}, {pipeline_mode = #tpu.pipeline_mode<synchronous>, transform_indices = @transform_10, window_bounds = array<i64: 1, 32>}, {pipeline_mode = #tpu.pipeline_mode<synchronous>, transform_indices = @transform_11, window_bounds = array<i64: 64, 32>}, {pipeline_mode = #tpu.pipeline_mode<synchronous>, transform_indices = @transform_12, window_bounds = array<i64: 256, 32>}, {pipeline_mode = #tpu.pipeline_mode<synchronous>, transform_indices = @transform_13, window_bounds = array<i64: 1, 32>}, {transform_indices = @transform_14, window_bounds = array<i64: 1, 32, 16>}]} {
    %c0 = arith.constant 0 : index
    %c0_0 = arith.constant 0 : index
    %c0_1 = arith.constant 0 : index
    %0 = vector.load %arg1[%c0, %c0_0, %c0_1] : memref<1x16x3xf32, #tpu.memory_space<vmem>>, vector<1x16x3xf32>
    %1 = vector.shape_cast %0 : vector<1x16x3xf32> to vector<16x3xf32>
    %c0_2 = arith.constant 0 : index
    %c0_3 = arith.constant 0 : index
    %c0_4 = arith.constant 0 : index
    %2 = vector.load %arg2[%c0_2, %c0_3, %c0_4] : memref<1x128x1xi32, #tpu.memory_space<vmem>>, vector<1x128x1xi32>
    %3 = vector.shape_cast %2 : vector<1x128x1xi32> to vector<128x1xi32>
    %4 = tpu.iota {dimensions = array<i32: 1>} : vector<128x16xi32>
    %5 = vector.broadcast %3 : vector<128x1xi32> to vector<128x16xi32>
    %6 = arith.cmpi eq, %4, %5 : vector<128x16xi32>
    %cst = arith.constant 1.000000e+00 : f32
    %cst_5 = arith.constant 0.000000e+00 : f32
    %7 = vector.broadcast %cst : f32 to vector<128x16xf32>
    %8 = vector.broadcast %cst_5 : f32 to vector<128x16xf32>
    %9 = arith.select %6, %7, %8 : vector<128x16xi1>, vector<128x16xf32>
    %10 = arith.truncf %9 : vector<128x16xf32> to vector<128x16xbf16>
    %c0_6 = arith.constant 0 : index
    %c0_7 = arith.constant 0 : index
    %11 = vector.load %arg3[%c0_6, %c0_7] : memref<6x16xf32, #tpu.memory_space<vmem>>, vector<6x16xf32>
    %12 = arith.truncf %11 : vector<6x16xf32> to vector<6x16xbf16>
    %c0_8 = arith.constant 0 : index
    %c0_9 = arith.constant 0 : index
    %13 = vector.load %arg4[%c0_8, %c0_9] : memref<1x16xf32, #tpu.memory_space<vmem>>, vector<1x16xf32>
    %c0_10 = arith.constant 0 : index
    %c0_11 = arith.constant 0 : index
    %14 = vector.load %arg5[%c0_10, %c0_11] : memref<16x4xf32, #tpu.memory_space<vmem>>, vector<16x4xf32>
    %15 = arith.truncf %14 : vector<16x4xf32> to vector<16x4xbf16>
    %c0_12 = arith.constant 0 : index
    %c0_13 = arith.constant 0 : index
    %16 = vector.load %arg6[%c0_12, %c0_13] : memref<1x4xf32, #tpu.memory_space<vmem>>, vector<1x4xf32>
    %17 = arith.truncf %1 : vector<16x3xf32> to vector<16x3xbf16>
    %cst_14 = arith.constant dense<0.000000e+00> : vector<128x3xf32>
    %18 = tpu.matmul %10, %17, %cst_14 {dimension_numbers = #tpu.dot_dimension_numbers<[1], [0], [0], [1], [0, 0, 1, 1], [], []>} : vector<128x16xbf16>, vector<16x3xbf16>, vector<128x3xf32> -> vector<128x3xf32>
    %19 = tpu.concatenate %1, %1, %1, %1, %1, %1, %1, %1 in 0 : vector<16x3xf32>, vector<16x3xf32>, vector<16x3xf32>, vector<16x3xf32>, vector<16x3xf32>, vector<16x3xf32>, vector<16x3xf32>, vector<16x3xf32> -> vector<128x3xf32>
    %20 = arith.subf %18, %19 : vector<128x3xf32>
    %21 = tpu.concatenate %19, %20 in 1 : vector<128x3xf32>, vector<128x3xf32> -> vector<128x6xf32>
    %22 = arith.truncf %21 : vector<128x6xf32> to vector<128x6xbf16>
    %cst_15 = arith.constant dense<0.000000e+00> : vector<128x16xf32>
    %23 = tpu.matmul %22, %12, %cst_15 {dimension_numbers = #tpu.dot_dimension_numbers<[1], [0], [0], [1], [0, 0, 1, 1], [], []>} : vector<128x6xbf16>, vector<6x16xbf16>, vector<128x16xf32> -> vector<128x16xf32>
    %24 = vector.broadcast %13 : vector<1x16xf32> to vector<128x16xf32>
    %25 = arith.addf %23, %24 : vector<128x16xf32>
    %cst_16 = arith.constant 0.000000e+00 : f32
    %26 = vector.broadcast %cst_16 : f32 to vector<128x16xf32>
    %27 = arith.maximumf %25, %26 : vector<128x16xf32>
    %28 = arith.truncf %27 : vector<128x16xf32> to vector<128x16xbf16>
    %cst_17 = arith.constant dense<0.000000e+00> : vector<128x4xf32>
    %29 = tpu.matmul %28, %15, %cst_17 {dimension_numbers = #tpu.dot_dimension_numbers<[1], [0], [0], [1], [0, 0, 1, 1], [], []>} : vector<128x16xbf16>, vector<16x4xbf16>, vector<128x4xf32> -> vector<128x4xf32>
    %30 = vector.broadcast %16 : vector<1x4xf32> to vector<128x4xf32>
    %31 = arith.addf %29, %30 : vector<128x4xf32>
    %cst_18 = arith.constant dense<0xFF800000> : vector<128xf32>
    %32 = vector.multi_reduction <maximumf>, %31, %cst_18 [1] : vector<128x4xf32> to vector<128xf32>
    %33 = vector.shape_cast %32 : vector<128xf32> to vector<128x1xf32>
    %34 = vector.broadcast %33 : vector<128x1xf32> to vector<128x4xf32>
    %35 = arith.subf %31, %34 : vector<128x4xf32>
    %36 = math.exp %35 : vector<128x4xf32>
    %cst_19 = arith.constant dense<0.000000e+00> : vector<128xf32>
    %37 = vector.multi_reduction <add>, %36, %cst_19 [1] : vector<128x4xf32> to vector<128xf32>
    %38 = vector.shape_cast %37 : vector<128xf32> to vector<128x1xf32>
    %39 = vector.broadcast %38 : vector<128x1xf32> to vector<128x4xf32>
    %40 = arith.divf %36, %39 : vector<128x4xf32>
    %41 = vector.extract_strided_slice %40 {offsets = [0, 0], sizes = [128, 1], strides = [1, 1]} : vector<128x4xf32> to vector<128x1xf32>
    %cst_20 = arith.constant 0.000000e+00 : f32
    %42 = vector.broadcast %cst_20 : f32 to vector<16x16xf32>
    %43 = vector.extract_strided_slice %9 {offsets = [0, 0], sizes = [16, 16], strides = [1, 1]} : vector<128x16xf32> to vector<16x16xf32>
    %44 = vector.extract_strided_slice %41 {offsets = [0, 0], sizes = [16, 1], strides = [1, 1]} : vector<128x1xf32> to vector<16x1xf32>
    %45 = vector.broadcast %44 : vector<16x1xf32> to vector<16x16xf32>
    %46 = arith.mulf %43, %45 : vector<16x16xf32>
    %47 = arith.addf %42, %46 : vector<16x16xf32>
    %48 = vector.extract_strided_slice %9 {offsets = [16, 0], sizes = [16, 16], strides = [1, 1]} : vector<128x16xf32> to vector<16x16xf32>
    %49 = vector.extract_strided_slice %41 {offsets = [16, 0], sizes = [16, 1], strides = [1, 1]} : vector<128x1xf32> to vector<16x1xf32>
    %50 = vector.broadcast %49 : vector<16x1xf32> to vector<16x16xf32>
    %51 = arith.mulf %48, %50 : vector<16x16xf32>
    %52 = arith.addf %47, %51 : vector<16x16xf32>
    %53 = vector.extract_strided_slice %9 {offsets = [32, 0], sizes = [16, 16], strides = [1, 1]} : vector<128x16xf32> to vector<16x16xf32>
    %54 = vector.extract_strided_slice %41 {offsets = [32, 0], sizes = [16, 1], strides = [1, 1]} : vector<128x1xf32> to vector<16x1xf32>
    %55 = vector.broadcast %54 : vector<16x1xf32> to vector<16x16xf32>
    %56 = arith.mulf %53, %55 : vector<16x16xf32>
    %57 = arith.addf %52, %56 : vector<16x16xf32>
    %58 = vector.extract_strided_slice %9 {offsets = [48, 0], sizes = [16, 16], strides = [1, 1]} : vector<128x16xf32> to vector<16x16xf32>
    %59 = vector.extract_strided_slice %41 {offsets = [48, 0], sizes = [16, 1], strides = [1, 1]} : vector<128x1xf32> to vector<16x1xf32>
    %60 = vector.broadcast %59 : vector<16x1xf32> to vector<16x16xf32>
    %61 = arith.mulf %58, %60 : vector<16x16xf32>
    %62 = arith.addf %57, %61 : vector<16x16xf32>
    %63 = vector.extract_strided_slice %9 {offsets = [64, 0], sizes = [16, 16], strides = [1, 1]} : vector<128x16xf32> to vector<16x16xf32>
    %64 = vector.extract_strided_slice %41 {offsets = [64, 0], sizes = [16, 1], strides = [1, 1]} : vector<128x1xf32> to vector<16x1xf32>
    %65 = vector.broadcast %64 : vector<16x1xf32> to vector<16x16xf32>
    %66 = arith.mulf %63, %65 : vector<16x16xf32>
    %67 = arith.addf %62, %66 : vector<16x16xf32>
    %68 = vector.extract_strided_slice %9 {offsets = [80, 0], sizes = [16, 16], strides = [1, 1]} : vector<128x16xf32> to vector<16x16xf32>
    %69 = vector.extract_strided_slice %41 {offsets = [80, 0], sizes = [16, 1], strides = [1, 1]} : vector<128x1xf32> to vector<16x1xf32>
    %70 = vector.broadcast %69 : vector<16x1xf32> to vector<16x16xf32>
    %71 = arith.mulf %68, %70 : vector<16x16xf32>
    %72 = arith.addf %67, %71 : vector<16x16xf32>
    %73 = vector.extract_strided_slice %9 {offsets = [96, 0], sizes = [16, 16], strides = [1, 1]} : vector<128x16xf32> to vector<16x16xf32>
    %74 = vector.extract_strided_slice %41 {offsets = [96, 0], sizes = [16, 1], strides = [1, 1]} : vector<128x1xf32> to vector<16x1xf32>
    %75 = vector.broadcast %74 : vector<16x1xf32> to vector<16x16xf32>
    %76 = arith.mulf %73, %75 : vector<16x16xf32>
    %77 = arith.addf %72, %76 : vector<16x16xf32>
    %78 = vector.extract_strided_slice %9 {offsets = [112, 0], sizes = [16, 16], strides = [1, 1]} : vector<128x16xf32> to vector<16x16xf32>
    %79 = vector.extract_strided_slice %41 {offsets = [112, 0], sizes = [16, 1], strides = [1, 1]} : vector<128x1xf32> to vector<16x1xf32>
    %80 = vector.broadcast %79 : vector<16x1xf32> to vector<16x16xf32>
    %81 = arith.mulf %78, %80 : vector<16x16xf32>
    %82 = arith.addf %77, %81 : vector<16x16xf32>
    %83 = vector.extract_strided_slice %40 {offsets = [0, 1], sizes = [128, 1], strides = [1, 1]} : vector<128x4xf32> to vector<128x1xf32>
    %cst_21 = arith.constant 0.000000e+00 : f32
    %84 = vector.broadcast %cst_21 : f32 to vector<16x16xf32>
    %85 = vector.extract_strided_slice %9 {offsets = [0, 0], sizes = [16, 16], strides = [1, 1]} : vector<128x16xf32> to vector<16x16xf32>
    %86 = vector.extract_strided_slice %83 {offsets = [0, 0], sizes = [16, 1], strides = [1, 1]} : vector<128x1xf32> to vector<16x1xf32>
    %87 = vector.broadcast %86 : vector<16x1xf32> to vector<16x16xf32>
    %88 = arith.mulf %85, %87 : vector<16x16xf32>
    %89 = arith.addf %84, %88 : vector<16x16xf32>
    %90 = vector.extract_strided_slice %9 {offsets = [16, 0], sizes = [16, 16], strides = [1, 1]} : vector<128x16xf32> to vector<16x16xf32>
    %91 = vector.extract_strided_slice %83 {offsets = [16, 0], sizes = [16, 1], strides = [1, 1]} : vector<128x1xf32> to vector<16x1xf32>
    %92 = vector.broadcast %91 : vector<16x1xf32> to vector<16x16xf32>
    %93 = arith.mulf %90, %92 : vector<16x16xf32>
    %94 = arith.addf %89, %93 : vector<16x16xf32>
    %95 = vector.extract_strided_slice %9 {offsets = [32, 0], sizes = [16, 16], strides = [1, 1]} : vector<128x16xf32> to vector<16x16xf32>
    %96 = vector.extract_strided_slice %83 {offsets = [32, 0], sizes = [16, 1], strides = [1, 1]} : vector<128x1xf32> to vector<16x1xf32>
    %97 = vector.broadcast %96 : vector<16x1xf32> to vector<16x16xf32>
    %98 = arith.mulf %95, %97 : vector<16x16xf32>
    %99 = arith.addf %94, %98 : vector<16x16xf32>
    %100 = vector.extract_strided_slice %9 {offsets = [48, 0], sizes = [16, 16], strides = [1, 1]} : vector<128x16xf32> to vector<16x16xf32>
    %101 = vector.extract_strided_slice %83 {offsets = [48, 0], sizes = [16, 1], strides = [1, 1]} : vector<128x1xf32> to vector<16x1xf32>
    %102 = vector.broadcast %101 : vector<16x1xf32> to vector<16x16xf32>
    %103 = arith.mulf %100, %102 : vector<16x16xf32>
    %104 = arith.addf %99, %103 : vector<16x16xf32>
    %105 = vector.extract_strided_slice %9 {offsets = [64, 0], sizes = [16, 16], strides = [1, 1]} : vector<128x16xf32> to vector<16x16xf32>
    %106 = vector.extract_strided_slice %83 {offsets = [64, 0], sizes = [16, 1], strides = [1, 1]} : vector<128x1xf32> to vector<16x1xf32>
    %107 = vector.broadcast %106 : vector<16x1xf32> to vector<16x16xf32>
    %108 = arith.mulf %105, %107 : vector<16x16xf32>
    %109 = arith.addf %104, %108 : vector<16x16xf32>
    %110 = vector.extract_strided_slice %9 {offsets = [80, 0], sizes = [16, 16], strides = [1, 1]} : vector<128x16xf32> to vector<16x16xf32>
    %111 = vector.extract_strided_slice %83 {offsets = [80, 0], sizes = [16, 1], strides = [1, 1]} : vector<128x1xf32> to vector<16x1xf32>
    %112 = vector.broadcast %111 : vector<16x1xf32> to vector<16x16xf32>
    %113 = arith.mulf %110, %112 : vector<16x16xf32>
    %114 = arith.addf %109, %113 : vector<16x16xf32>
    %115 = vector.extract_strided_slice %9 {offsets = [96, 0], sizes = [16, 16], strides = [1, 1]} : vector<128x16xf32> to vector<16x16xf32>
    %116 = vector.extract_strided_slice %83 {offsets = [96, 0], sizes = [16, 1], strides = [1, 1]} : vector<128x1xf32> to vector<16x1xf32>
    %117 = vector.broadcast %116 : vector<16x1xf32> to vector<16x16xf32>
    %118 = arith.mulf %115, %117 : vector<16x16xf32>
    %119 = arith.addf %114, %118 : vector<16x16xf32>
    %120 = vector.extract_strided_slice %9 {offsets = [112, 0], sizes = [16, 16], strides = [1, 1]} : vector<128x16xf32> to vector<16x16xf32>
    %121 = vector.extract_strided_slice %83 {offsets = [112, 0], sizes = [16, 1], strides = [1, 1]} : vector<128x1xf32> to vector<16x1xf32>
    %122 = vector.broadcast %121 : vector<16x1xf32> to vector<16x16xf32>
    %123 = arith.mulf %120, %122 : vector<16x16xf32>
    %124 = arith.addf %119, %123 : vector<16x16xf32>
    %125 = vector.extract_strided_slice %40 {offsets = [0, 2], sizes = [128, 1], strides = [1, 1]} : vector<128x4xf32> to vector<128x1xf32>
    %cst_22 = arith.constant 0.000000e+00 : f32
    %126 = vector.broadcast %cst_22 : f32 to vector<16x16xf32>
    %127 = vector.extract_strided_slice %9 {offsets = [0, 0], sizes = [16, 16], strides = [1, 1]} : vector<128x16xf32> to vector<16x16xf32>
    %128 = vector.extract_strided_slice %125 {offsets = [0, 0], sizes = [16, 1], strides = [1, 1]} : vector<128x1xf32> to vector<16x1xf32>
    %129 = vector.broadcast %128 : vector<16x1xf32> to vector<16x16xf32>
    %130 = arith.mulf %127, %129 : vector<16x16xf32>
    %131 = arith.addf %126, %130 : vector<16x16xf32>
    %132 = vector.extract_strided_slice %9 {offsets = [16, 0], sizes = [16, 16], strides = [1, 1]} : vector<128x16xf32> to vector<16x16xf32>
    %133 = vector.extract_strided_slice %125 {offsets = [16, 0], sizes = [16, 1], strides = [1, 1]} : vector<128x1xf32> to vector<16x1xf32>
    %134 = vector.broadcast %133 : vector<16x1xf32> to vector<16x16xf32>
    %135 = arith.mulf %132, %134 : vector<16x16xf32>
    %136 = arith.addf %131, %135 : vector<16x16xf32>
    %137 = vector.extract_strided_slice %9 {offsets = [32, 0], sizes = [16, 16], strides = [1, 1]} : vector<128x16xf32> to vector<16x16xf32>
    %138 = vector.extract_strided_slice %125 {offsets = [32, 0], sizes = [16, 1], strides = [1, 1]} : vector<128x1xf32> to vector<16x1xf32>
    %139 = vector.broadcast %138 : vector<16x1xf32> to vector<16x16xf32>
    %140 = arith.mulf %137, %139 : vector<16x16xf32>
    %141 = arith.addf %136, %140 : vector<16x16xf32>
    %142 = vector.extract_strided_slice %9 {offsets = [48, 0], sizes = [16, 16], strides = [1, 1]} : vector<128x16xf32> to vector<16x16xf32>
    %143 = vector.extract_strided_slice %125 {offsets = [48, 0], sizes = [16, 1], strides = [1, 1]} : vector<128x1xf32> to vector<16x1xf32>
    %144 = vector.broadcast %143 : vector<16x1xf32> to vector<16x16xf32>
    %145 = arith.mulf %142, %144 : vector<16x16xf32>
    %146 = arith.addf %141, %145 : vector<16x16xf32>
    %147 = vector.extract_strided_slice %9 {offsets = [64, 0], sizes = [16, 16], strides = [1, 1]} : vector<128x16xf32> to vector<16x16xf32>
    %148 = vector.extract_strided_slice %125 {offsets = [64, 0], sizes = [16, 1], strides = [1, 1]} : vector<128x1xf32> to vector<16x1xf32>
    %149 = vector.broadcast %148 : vector<16x1xf32> to vector<16x16xf32>
    %150 = arith.mulf %147, %149 : vector<16x16xf32>
    %151 = arith.addf %146, %150 : vector<16x16xf32>
    %152 = vector.extract_strided_slice %9 {offsets = [80, 0], sizes = [16, 16], strides = [1, 1]} : vector<128x16xf32> to vector<16x16xf32>
    %153 = vector.extract_strided_slice %125 {offsets = [80, 0], sizes = [16, 1], strides = [1, 1]} : vector<128x1xf32> to vector<16x1xf32>
    %154 = vector.broadcast %153 : vector<16x1xf32> to vector<16x16xf32>
    %155 = arith.mulf %152, %154 : vector<16x16xf32>
    %156 = arith.addf %151, %155 : vector<16x16xf32>
    %157 = vector.extract_strided_slice %9 {offsets = [96, 0], sizes = [16, 16], strides = [1, 1]} : vector<128x16xf32> to vector<16x16xf32>
    %158 = vector.extract_strided_slice %125 {offsets = [96, 0], sizes = [16, 1], strides = [1, 1]} : vector<128x1xf32> to vector<16x1xf32>
    %159 = vector.broadcast %158 : vector<16x1xf32> to vector<16x16xf32>
    %160 = arith.mulf %157, %159 : vector<16x16xf32>
    %161 = arith.addf %156, %160 : vector<16x16xf32>
    %162 = vector.extract_strided_slice %9 {offsets = [112, 0], sizes = [16, 16], strides = [1, 1]} : vector<128x16xf32> to vector<16x16xf32>
    %163 = vector.extract_strided_slice %125 {offsets = [112, 0], sizes = [16, 1], strides = [1, 1]} : vector<128x1xf32> to vector<16x1xf32>
    %164 = vector.broadcast %163 : vector<16x1xf32> to vector<16x16xf32>
    %165 = arith.mulf %162, %164 : vector<16x16xf32>
    %166 = arith.addf %161, %165 : vector<16x16xf32>
    %167 = vector.extract_strided_slice %40 {offsets = [0, 3], sizes = [128, 1], strides = [1, 1]} : vector<128x4xf32> to vector<128x1xf32>
    %cst_23 = arith.constant 0.000000e+00 : f32
    %168 = vector.broadcast %cst_23 : f32 to vector<16x16xf32>
    %169 = vector.extract_strided_slice %9 {offsets = [0, 0], sizes = [16, 16], strides = [1, 1]} : vector<128x16xf32> to vector<16x16xf32>
    %170 = vector.extract_strided_slice %167 {offsets = [0, 0], sizes = [16, 1], strides = [1, 1]} : vector<128x1xf32> to vector<16x1xf32>
    %171 = vector.broadcast %170 : vector<16x1xf32> to vector<16x16xf32>
    %172 = arith.mulf %169, %171 : vector<16x16xf32>
    %173 = arith.addf %168, %172 : vector<16x16xf32>
    %174 = vector.extract_strided_slice %9 {offsets = [16, 0], sizes = [16, 16], strides = [1, 1]} : vector<128x16xf32> to vector<16x16xf32>
    %175 = vector.extract_strided_slice %167 {offsets = [16, 0], sizes = [16, 1], strides = [1, 1]} : vector<128x1xf32> to vector<16x1xf32>
    %176 = vector.broadcast %175 : vector<16x1xf32> to vector<16x16xf32>
    %177 = arith.mulf %174, %176 : vector<16x16xf32>
    %178 = arith.addf %173, %177 : vector<16x16xf32>
    %179 = vector.extract_strided_slice %9 {offsets = [32, 0], sizes = [16, 16], strides = [1, 1]} : vector<128x16xf32> to vector<16x16xf32>
    %180 = vector.extract_strided_slice %167 {offsets = [32, 0], sizes = [16, 1], strides = [1, 1]} : vector<128x1xf32> to vector<16x1xf32>
    %181 = vector.broadcast %180 : vector<16x1xf32> to vector<16x16xf32>
    %182 = arith.mulf %179, %181 : vector<16x16xf32>
    %183 = arith.addf %178, %182 : vector<16x16xf32>
    %184 = vector.extract_strided_slice %9 {offsets = [48, 0], sizes = [16, 16], strides = [1, 1]} : vector<128x16xf32> to vector<16x16xf32>
    %185 = vector.extract_strided_slice %167 {offsets = [48, 0], sizes = [16, 1], strides = [1, 1]} : vector<128x1xf32> to vector<16x1xf32>
    %186 = vector.broadcast %185 : vector<16x1xf32> to vector<16x16xf32>
    %187 = arith.mulf %184, %186 : vector<16x16xf32>
    %188 = arith.addf %183, %187 : vector<16x16xf32>
    %189 = vector.extract_strided_slice %9 {offsets = [64, 0], sizes = [16, 16], strides = [1, 1]} : vector<128x16xf32> to vector<16x16xf32>
    %190 = vector.extract_strided_slice %167 {offsets = [64, 0], sizes = [16, 1], strides = [1, 1]} : vector<128x1xf32> to vector<16x1xf32>
    %191 = vector.broadcast %190 : vector<16x1xf32> to vector<16x16xf32>
    %192 = arith.mulf %189, %191 : vector<16x16xf32>
    %193 = arith.addf %188, %192 : vector<16x16xf32>
    %194 = vector.extract_strided_slice %9 {offsets = [80, 0], sizes = [16, 16], strides = [1, 1]} : vector<128x16xf32> to vector<16x16xf32>
    %195 = vector.extract_strided_slice %167 {offsets = [80, 0], sizes = [16, 1], strides = [1, 1]} : vector<128x1xf32> to vector<16x1xf32>
    %196 = vector.broadcast %195 : vector<16x1xf32> to vector<16x16xf32>
    %197 = arith.mulf %194, %196 : vector<16x16xf32>
    %198 = arith.addf %193, %197 : vector<16x16xf32>
    %199 = vector.extract_strided_slice %9 {offsets = [96, 0], sizes = [16, 16], strides = [1, 1]} : vector<128x16xf32> to vector<16x16xf32>
    %200 = vector.extract_strided_slice %167 {offsets = [96, 0], sizes = [16, 1], strides = [1, 1]} : vector<128x1xf32> to vector<16x1xf32>
    %201 = vector.broadcast %200 : vector<16x1xf32> to vector<16x16xf32>
    %202 = arith.mulf %199, %201 : vector<16x16xf32>
    %203 = arith.addf %198, %202 : vector<16x16xf32>
    %204 = vector.extract_strided_slice %9 {offsets = [112, 0], sizes = [16, 16], strides = [1, 1]} : vector<128x16xf32> to vector<16x16xf32>
    %205 = vector.extract_strided_slice %167 {offsets = [112, 0], sizes = [16, 1], strides = [1, 1]} : vector<128x1xf32> to vector<16x1xf32>
    %206 = vector.broadcast %205 : vector<16x1xf32> to vector<16x16xf32>
    %207 = arith.mulf %204, %206 : vector<16x16xf32>
    %208 = arith.addf %203, %207 : vector<16x16xf32>
    %209 = tpu.concatenate %82, %124, %166, %208 in 0 : vector<16x16xf32>, vector<16x16xf32>, vector<16x16xf32>, vector<16x16xf32> -> vector<64x16xf32>
    %210 = arith.truncf %209 : vector<64x16xf32> to vector<64x16xbf16>
    %c0_24 = arith.constant 0 : index
    %c0_25 = arith.constant 0 : index
    %211 = vector.load %arg7[%c0_24, %c0_25] : memref<3x32xf32, #tpu.memory_space<vmem>>, vector<3x32xf32>
    %212 = arith.truncf %211 : vector<3x32xf32> to vector<3x32xbf16>
    %c0_26 = arith.constant 0 : index
    %c0_27 = arith.constant 0 : index
    %213 = vector.load %arg8[%c0_26, %c0_27] : memref<1x32xf32, #tpu.memory_space<vmem>>, vector<1x32xf32>
    %214 = arith.truncf %1 : vector<16x3xf32> to vector<16x3xbf16>
    %cst_28 = arith.constant dense<0.000000e+00> : vector<16x32xf32>
    %215 = tpu.matmul %214, %212, %cst_28 {dimension_numbers = #tpu.dot_dimension_numbers<[1], [0], [0], [1], [0, 0, 1, 1], [], []>} : vector<16x3xbf16>, vector<3x32xbf16>, vector<16x32xf32> -> vector<16x32xf32>
    %216 = vector.broadcast %213 : vector<1x32xf32> to vector<16x32xf32>
    %217 = arith.addf %215, %216 : vector<16x32xf32>
    %cst_29 = arith.constant 0.000000e+00 : f32
    %218 = vector.broadcast %cst_29 : f32 to vector<16x32xf32>
    %219 = arith.maximumf %217, %218 : vector<16x32xf32>
    %c0_30 = arith.constant 0 : index
    %c0_31 = arith.constant 0 : index
    %220 = vector.load %arg9[%c0_30, %c0_31] : memref<32x32xf32, #tpu.memory_space<vmem>>, vector<32x32xf32>
    %221 = arith.truncf %220 : vector<32x32xf32> to vector<32x32xbf16>
    %c0_32 = arith.constant 0 : index
    %c0_33 = arith.constant 0 : index
    %222 = vector.load %arg10[%c0_32, %c0_33] : memref<128x32xf32, #tpu.memory_space<vmem>>, vector<128x32xf32>
    %223 = arith.truncf %222 : vector<128x32xf32> to vector<128x32xbf16>
    %c0_34 = arith.constant 0 : index
    %c0_35 = arith.constant 0 : index
    %224 = vector.load %arg11[%c0_34, %c0_35] : memref<1x32xf32, #tpu.memory_space<vmem>>, vector<1x32xf32>
    %225 = arith.truncf %219 : vector<16x32xf32> to vector<16x32xbf16>
    %cst_36 = arith.constant dense<0.000000e+00> : vector<16x32xf32>
    %226 = tpu.matmul %225, %221, %cst_36 {dimension_numbers = #tpu.dot_dimension_numbers<[1], [0], [0], [1], [0, 0, 1, 1], [], []>} : vector<16x32xbf16>, vector<32x32xbf16>, vector<16x32xf32> -> vector<16x32xf32>
    %cst_37 = arith.constant dense<0.000000e+00> : vector<64x32xf32>
    %227 = tpu.matmul %210, %225, %cst_37 {dimension_numbers = #tpu.dot_dimension_numbers<[1], [0], [0], [1], [0, 0, 1, 1], [], []>} : vector<64x16xbf16>, vector<16x32xbf16>, vector<64x32xf32> -> vector<64x32xf32>
    %228 = vector.extract_strided_slice %227 {offsets = [0, 0], sizes = [16, 32], strides = [1, 1]} : vector<64x32xf32> to vector<16x32xf32>
    %229 = vector.extract_strided_slice %227 {offsets = [16, 0], sizes = [16, 32], strides = [1, 1]} : vector<64x32xf32> to vector<16x32xf32>
    %230 = vector.extract_strided_slice %227 {offsets = [32, 0], sizes = [16, 32], strides = [1, 1]} : vector<64x32xf32> to vector<16x32xf32>
    %231 = vector.extract_strided_slice %227 {offsets = [48, 0], sizes = [16, 32], strides = [1, 1]} : vector<64x32xf32> to vector<16x32xf32>
    %232 = tpu.concatenate %228, %229, %230, %231 in 1 : vector<16x32xf32>, vector<16x32xf32>, vector<16x32xf32>, vector<16x32xf32> -> vector<16x128xf32>
    %cst_38 = arith.constant 1.250000e-01 : f32
    %233 = vector.broadcast %cst_38 : f32 to vector<16x128xf32>
    %234 = arith.mulf %232, %233 : vector<16x128xf32>
    %235 = arith.truncf %234 : vector<16x128xf32> to vector<16x128xbf16>
    %cst_39 = arith.constant dense<0.000000e+00> : vector<16x32xf32>
    %236 = tpu.matmul %235, %223, %cst_39 {dimension_numbers = #tpu.dot_dimension_numbers<[1], [0], [0], [1], [0, 0, 1, 1], [], []>} : vector<16x128xbf16>, vector<128x32xbf16>, vector<16x32xf32> -> vector<16x32xf32>
    %237 = arith.addf %226, %236 : vector<16x32xf32>
    %238 = vector.broadcast %224 : vector<1x32xf32> to vector<16x32xf32>
    %239 = arith.addf %237, %238 : vector<16x32xf32>
    %cst_40 = arith.constant 0.000000e+00 : f32
    %240 = vector.broadcast %cst_40 : f32 to vector<16x32xf32>
    %241 = arith.maximumf %239, %240 : vector<16x32xf32>
    %242 = arith.addf %241, %219 : vector<16x32xf32>
    %c0_41 = arith.constant 0 : index
    %c0_42 = arith.constant 0 : index
    %243 = vector.load %arg12[%c0_41, %c0_42] : memref<64x32xf32, #tpu.memory_space<vmem>>, vector<64x32xf32>
    %244 = arith.truncf %243 : vector<64x32xf32> to vector<64x32xbf16>
    %c0_43 = arith.constant 0 : index
    %c0_44 = arith.constant 0 : index
    %245 = vector.load %arg13[%c0_43, %c0_44] : memref<256x32xf32, #tpu.memory_space<vmem>>, vector<256x32xf32>
    %246 = arith.truncf %245 : vector<256x32xf32> to vector<256x32xbf16>
    %c0_45 = arith.constant 0 : index
    %c0_46 = arith.constant 0 : index
    %247 = vector.load %arg14[%c0_45, %c0_46] : memref<1x32xf32, #tpu.memory_space<vmem>>, vector<1x32xf32>
    %cst_47 = arith.constant dense<0xFF800000> : vector<32xf32>
    %248 = vector.multi_reduction <maximumf>, %242, %cst_47 [0] : vector<16x32xf32> to vector<32xf32>
    %249 = vector.shape_cast %248 : vector<32xf32> to vector<1x32xf32>
    %250 = vector.shape_cast %249 : vector<1x32xf32> to vector<1x32xf32>
    %251 = vector.broadcast %250 : vector<1x32xf32> to vector<16x32xf32>
    %252 = tpu.concatenate %251, %242 in 1 : vector<16x32xf32>, vector<16x32xf32> -> vector<16x64xf32>
    %253 = arith.truncf %252 : vector<16x64xf32> to vector<16x64xbf16>
    %cst_48 = arith.constant dense<0.000000e+00> : vector<16x32xf32>
    %254 = tpu.matmul %253, %244, %cst_48 {dimension_numbers = #tpu.dot_dimension_numbers<[1], [0], [0], [1], [0, 0, 1, 1], [], []>} : vector<16x64xbf16>, vector<64x32xbf16>, vector<16x32xf32> -> vector<16x32xf32>
    %cst_49 = arith.constant dense<0.000000e+00> : vector<64x64xf32>
    %255 = tpu.matmul %210, %253, %cst_49 {dimension_numbers = #tpu.dot_dimension_numbers<[1], [0], [0], [1], [0, 0, 1, 1], [], []>} : vector<64x16xbf16>, vector<16x64xbf16>, vector<64x64xf32> -> vector<64x64xf32>
    %256 = vector.extract_strided_slice %255 {offsets = [0, 0], sizes = [16, 64], strides = [1, 1]} : vector<64x64xf32> to vector<16x64xf32>
    %257 = vector.extract_strided_slice %255 {offsets = [16, 0], sizes = [16, 64], strides = [1, 1]} : vector<64x64xf32> to vector<16x64xf32>
    %258 = vector.extract_strided_slice %255 {offsets = [32, 0], sizes = [16, 64], strides = [1, 1]} : vector<64x64xf32> to vector<16x64xf32>
    %259 = vector.extract_strided_slice %255 {offsets = [48, 0], sizes = [16, 64], strides = [1, 1]} : vector<64x64xf32> to vector<16x64xf32>
    %260 = tpu.concatenate %256, %257, %258, %259 in 1 : vector<16x64xf32>, vector<16x64xf32>, vector<16x64xf32>, vector<16x64xf32> -> vector<16x256xf32>
    %cst_50 = arith.constant 1.250000e-01 : f32
    %261 = vector.broadcast %cst_50 : f32 to vector<16x256xf32>
    %262 = arith.mulf %260, %261 : vector<16x256xf32>
    %263 = arith.truncf %262 : vector<16x256xf32> to vector<16x256xbf16>
    %cst_51 = arith.constant dense<0.000000e+00> : vector<16x32xf32>
    %264 = tpu.matmul %263, %246, %cst_51 {dimension_numbers = #tpu.dot_dimension_numbers<[1], [0], [0], [1], [0, 0, 1, 1], [], []>} : vector<16x256xbf16>, vector<256x32xbf16>, vector<16x32xf32> -> vector<16x32xf32>
    %265 = arith.addf %254, %264 : vector<16x32xf32>
    %266 = vector.broadcast %247 : vector<1x32xf32> to vector<16x32xf32>
    %267 = arith.addf %265, %266 : vector<16x32xf32>
    %cst_52 = arith.constant 0.000000e+00 : f32
    %268 = vector.broadcast %cst_52 : f32 to vector<16x32xf32>
    %269 = arith.maximumf %267, %268 : vector<16x32xf32>
    %270 = tpu.transpose %269, [1, 0] : vector<16x32xf32> -> vector<32x16xf32>
    %c0_53 = arith.constant 0 : index
    %c0_54 = arith.constant 0 : index
    %c0_55 = arith.constant 0 : index
    %271 = vector.load %arg15[%c0_53, %c0_54, %c0_55] : memref<1x32x16xf32, #tpu.memory_space<vmem>>, vector<1x32x16xf32>
    %272 = vector.shape_cast %271 : vector<1x32x16xf32> to vector<32x16xf32>
    %273 = vector.shape_cast %270 : vector<32x16xf32> to vector<1x32x16xf32>
    tpu.vector_store %arg15[%c0_53, %c0_54, %c0_55], %273 {strides = array<i32>} : memref<1x32x16xf32, #tpu.memory_space<vmem>>, vector<1x32x16xf32>,
    return
  }
  func.func @transform_0(%arg0: i32) -> (i32, i32, i32) {
    %c0_i32 = arith.constant 0 : i32
    %c0_i32_0 = arith.constant 0 : i32
    %c0_i32_1 = arith.constant 0 : i32
    return %arg0, %c0_i32, %c0_i32_0 : i32, i32, i32
  }
  func.func @transform_1(%arg0: i32) -> (i32, i32, i32) {
    %c0_i32 = arith.constant 0 : i32
    %c0_i32_0 = arith.constant 0 : i32
    %c0_i32_1 = arith.constant 0 : i32
    return %arg0, %c0_i32, %c0_i32_0 : i32, i32, i32
  }
  func.func @transform_2(%arg0: i32) -> (i32, i32) {
    %c0_i32 = arith.constant 0 : i32
    %c0_i32_0 = arith.constant 0 : i32
    %c0_i32_1 = arith.constant 0 : i32
    return %c0_i32, %c0_i32_0 : i32, i32
  }
  func.func @transform_3(%arg0: i32) -> (i32, i32) {
    %c0_i32 = arith.constant 0 : i32
    %c0_i32_0 = arith.constant 0 : i32
    %c0_i32_1 = arith.constant 0 : i32
    return %c0_i32, %c0_i32_0 : i32, i32
  }
  func.func @transform_4(%arg0: i32) -> (i32, i32) {
    %c0_i32 = arith.constant 0 : i32
    %c0_i32_0 = arith.constant 0 : i32
    %c0_i32_1 = arith.constant 0 : i32
    return %c0_i32, %c0_i32_0 : i32, i32
  }
  func.func @transform_5(%arg0: i32) -> (i32, i32) {
    %c0_i32 = arith.constant 0 : i32
    %c0_i32_0 = arith.constant 0 : i32
    %c0_i32_1 = arith.constant 0 : i32
    return %c0_i32, %c0_i32_0 : i32, i32
  }
  func.func @transform_6(%arg0: i32) -> (i32, i32) {
    %c0_i32 = arith.constant 0 : i32
    %c0_i32_0 = arith.constant 0 : i32
    %c0_i32_1 = arith.constant 0 : i32
    return %c0_i32, %c0_i32_0 : i32, i32
  }
  func.func @transform_7(%arg0: i32) -> (i32, i32) {
    %c0_i32 = arith.constant 0 : i32
    %c0_i32_0 = arith.constant 0 : i32
    %c0_i32_1 = arith.constant 0 : i32
    return %c0_i32, %c0_i32_0 : i32, i32
  }
  func.func @transform_8(%arg0: i32) -> (i32, i32) {
    %c0_i32 = arith.constant 0 : i32
    %c0_i32_0 = arith.constant 0 : i32
    %c0_i32_1 = arith.constant 0 : i32
    return %c0_i32, %c0_i32_0 : i32, i32
  }
  func.func @transform_9(%arg0: i32) -> (i32, i32) {
    %c0_i32 = arith.constant 0 : i32
    %c0_i32_0 = arith.constant 0 : i32
    %c0_i32_1 = arith.constant 0 : i32
    return %c0_i32, %c0_i32_0 : i32, i32
  }
  func.func @transform_10(%arg0: i32) -> (i32, i32) {
    %c0_i32 = arith.constant 0 : i32
    %c0_i32_0 = arith.constant 0 : i32
    %c0_i32_1 = arith.constant 0 : i32
    return %c0_i32, %c0_i32_0 : i32, i32
  }
  func.func @transform_11(%arg0: i32) -> (i32, i32) {
    %c0_i32 = arith.constant 0 : i32
    %c0_i32_0 = arith.constant 0 : i32
    %c0_i32_1 = arith.constant 0 : i32
    return %c0_i32, %c0_i32_0 : i32, i32
  }
  func.func @transform_12(%arg0: i32) -> (i32, i32) {
    %c0_i32 = arith.constant 0 : i32
    %c0_i32_0 = arith.constant 0 : i32
    %c0_i32_1 = arith.constant 0 : i32
    return %c0_i32, %c0_i32_0 : i32, i32
  }
  func.func @transform_13(%arg0: i32) -> (i32, i32) {
    %c0_i32 = arith.constant 0 : i32
    %c0_i32_0 = arith.constant 0 : i32
    %c0_i32_1 = arith.constant 0 : i32
    return %c0_i32, %c0_i32_0 : i32, i32
  }
  func.func @transform_14(%arg0: i32) -> (i32, i32, i32) {
    %c0_i32 = arith.constant 0 : i32
    %c0_i32_0 = arith.constant 0 : i32
    %c0_i32_1 = arith.constant 0 : i32
    return %arg0, %c0_i32, %c0_i32_0 : i32, i32, i32
  }
}

</mosaic_0001>

<bundles_post_ra>
// kernel: tpu_custom_call.1
= control target key start
LH: loop header
LB: loop body
LE: loop exit
PB: predicated region body
PF: predicated region fallthrough
CT: control target
= control target key end

     0   :  { %s2910_s29 = smov 0   ;;  %s3819_s0 = inlined_call_operand.vmem [shape: f32[2,16,3], index: 0, kind: input, shape index: {}]   ;;  %s3820_s1 = inlined_call_operand.vmem [shape: s32[2,128,1], index: 1, kind: input, shape index: {}]   ;;  %s3821_s2 = inlined_call_operand.vmem [shape: f32[6,16], index: 2, kind: input, shape index: {}]   ;;  %s3822_s3 = inlined_call_operand.vmem [shape: f32[1,16], index: 3, kind: input, shape index: {}]   ;;  %s3823_s4 = inlined_call_operand.vmem [shape: f32[16,4], index: 4, kind: input, shape index: {}]   ;;  %s3824_s5 = inlined_call_operand.vmem [shape: f32[1,4], index: 5, kind: input, shape index: {}]   ;;  %s3825_s6 = inlined_call_operand.vmem [shape: f32[3,32], index: 6, kind: input, shape index: {}]   ;;  %s3826_s7 = inlined_call_operand.vmem [shape: f32[1,32], index: 7, kind: input, shape index: {}]   ;;  %s3827_s8 = inlined_call_operand.vmem [shape: f32[32,32], index: 8, kind: input, shape index: {}]   ;;  %s3828_s9 = inlined_call_operand.vmem [shape: f32[128,32], index: 9, kind: input, shape index: {}]   ;;  %s3829_s10 = inlined_call_operand.vmem [shape: f32[1,32], index: 10, kind: input, shape index: {}]   ;;  %s3830_s11 = inlined_call_operand.vmem [shape: f32[64,32], index: 11, kind: input, shape index: {}]   ;;  %s3831_s12 = inlined_call_operand.vmem [shape: f32[256,32], index: 12, kind: input, shape index: {}]   ;;  %s3832_s13 = inlined_call_operand.vmem [shape: f32[1,32], index: 13, kind: input, shape index: {}]   ;;  %s3833_s14 = inlined_call_operand.vmem [shape: f32[2,32,16], index: 14, kind: output, shape index: {}]  }
   0x1 LB: > { %s2370_s30 = sadd.s32 4294967295, %s2822_s29   ;;  %p2374_p0 = scmp.ge.s32.totalorder %s2822_s29, 1  ;;  %s2822_s29 = sphi %s2910_s29, %s24_s29  }
   0x2   : > { %p422_p1 = scmp.lt.s32.totalorder %s2822_s29, 3 }
   0x4   : > { %p423_p2 = pnand %p2374_p0, %p422_p1 }
   0x5   : > { %p473_p3 = scmp.lt.s32.totalorder (!%p423_p2), %s2370_s30, 1  ;;  %s2826_s25 = smov (!%p423_p2), 3  }
   0x6   : > { %426 = sbr.rel (%p423_p2) target bundleno = 2838 (0xb16), region = 76  ;;  %s2832_s24 = smov (!%p423_p2), 32  }
   0x7   : > { %s2833_s23 = smov (!%p423_p2), 64  }
   0xb   : > { %v2824_v0 = vmov 0   ;;  %s3835_s30 = smov (!%p473_p3, %s2370_s30), 1  ;;  %v507_v20 = vlaneseq  ;;  %v2825_v26 = vmov 0.0   ;;  %vm605_vm4 = vcmask 130048   ;;  %v597_v63 = vld [vmem:[%s3821_s2] sm:$0x3f] }
   0xc   : > { %2647 = vset.pattern.permute.xlu1 %v2824_v0  ;;  %2646 = vset.pattern.permute.xlu0 %v2824_v0  ;;  %s2424_s15 = sshll.u32 %s3835_s30, 7  ;;  %s2423_s16 = sshll.u32 %s3835_s30, 4 }
   0xd   : > { %s2927_s19 = scalar_lea.vmem %s3820_s1, %s2424_s15  ;;  %s477_s22 = scalar_lea.vmem %s3819_s0, %s2423_s16  ;;  %v2960_v21 = vand.u32 127, %v507_v20 }
   0xe   : > { %v493_v1 = vld [vmem:[%s2927_s19 + $0x10] sm:$0xff]  ;;  %v2933_v2 = vld [vmem:[%s477_s22] sm:$0xff]  ;;  %v2935_v3 = vld [vmem:[%s477_s22 + $0x8] sm:$0xff] }
   0xf   : > { %516 = vperm.xlu1 %2647, %v493_v1   ;;  %v491_v4 = vld [vmem:[%s2927_s19] sm:$0xff]  ;;  %v2940_v5 = vpack.c.bf16 %v2935_v3, %v2933_v2  ;;  %v494_v6 = vld [vmem:[%s2927_s19 + $0x18] sm:$0xff]  ;;  %v492_v7 = vld [vmem:[%s2927_s19 + $0x8] sm:$0xff]  ;;  %v598_v1 = vpack.c.bf16 %v597_v63, %v597_v63 }
  0x10   : > { %510 = vperm.xlu0 %2646, %v491_v4   ;;  %v496_v8 = vld [vmem:[%s2927_s19 + $0x28] sm:$0xff]  ;;  %v495_v9 = vld [vmem:[%s2927_s19 + $0x20] sm:$0xff]  ;;  %v498_v10 = vld [vmem:[%s2927_s19 + $0x38] sm:$0xff] }
  0x11   : > { %2504 = vmatprep.subr.bf16.mxu0 %v2940_v5  ;;  %2624 = vmatprep.subr.bf16.mxu1 %v2940_v5  ;;  %v497_v11 = vld [vmem:[%s2927_s19 + $0x30] sm:$0xff]  ;;  %v500_v12 = vld [vmem:[%s2927_s19 + $0x48] sm:$0xff]  ;;  %v499_v13 = vld [vmem:[%s2927_s19 + $0x40] sm:$0xff] }
  0x12   : > { %2505 = vmatpush3.bf16.msra.mxu0 %v2940_v5  ;;  %2625 = vmatpush3.bf16.msra.mxu1 %v2940_v5  ;;  %v502_v14 = vld [vmem:[%s2927_s19 + $0x58] sm:$0xff]  ;;  %v501_v15 = vld [vmem:[%s2927_s19 + $0x50] sm:$0xff]  ;;  %v504_v16 = vld [vmem:[%s2927_s19 + $0x68] sm:$0xff] }
  0x13   : > { %519 = vperm.xlu1 %2647, %v494_v6   ;;  %v503_v17 = vld [vmem:[%s2927_s19 + $0x60] sm:$0xff]  ;;  %v506_v18 = vld [vmem:[%s2927_s19 + $0x78] sm:$0xff]  ;;  %v505_v19 = vld [vmem:[%s2927_s19 + $0x70] sm:$0xff] }
  0x14   : > { %513 = vperm.xlu0 %2646, %v492_v7  }
  0x17   : > { %525 = vperm.xlu1 %2647, %v496_v8  }
  0x18   : > { %522 = vperm.xlu0 %2646, %v495_v9  }
  0x1b   : > { %531 = vperm.xlu1 %2647, %v498_v10  }
  0x1c   : > { %528 = vperm.xlu0 %2646, %v497_v11  }
  0x1f   : > { %537 = vperm.xlu1 %2647, %v500_v12  }
  0x20   : > { %534 = vperm.xlu0 %2646, %v499_v13  }
  0x23   : > { %543 = vperm.xlu1 %2647, %v502_v14  }
  0x24   : > { %540 = vperm.xlu0 %2646, %v501_v15  }
  0x27   : > { %549 = vperm.xlu1 %2647, %v504_v16  }
  0x28   : > { %546 = vperm.xlu0 %2646, %v503_v17  }
  0x2b   : > { %555 = vperm.xlu1 %2647, %v506_v18  }
  0x2c   : > { %552 = vperm.xlu0 %2646, %v505_v19  }
  0x8a   : > { %v517_v22 = vpop.permute.xlu1 %516 }
  0x8b   : > { %v511_v23 = vpop.permute.xlu0 %510  ;;  %vm559_vm0 = vcmp.eq.s32.totalorder %v2960_v21, %v517_v22 }
  0x8c   : > { %vm557_vm1 = vcmp.eq.s32.totalorder %v2960_v21, %v511_v23  ;;  %v2966_v27 = vsel %vm559_vm0, 1.0, %v2825_v26 }
  0x8d   : > { %v2973_v29 = vsel %vm557_vm1, 1.0, %v2825_v26  ;;  %vm863_vm1 = vcmask 1042432  }
  0x8e   : > { %v520_v24 = vpop.permute.xlu1 %519  ;;  %2626 = vmatprep.subr.msk.bf16.mxu1 %vm863_vm1, %v598_v1  ;;  %v865_v6 = vsel %vm863_vm1, %v598_v1, 0 }
  0x8f   : > { %vm560_vm2 = vcmp.eq.s32.totalorder %v2960_v21, %v520_v24  ;;  %v514_v25 = vpop.permute.xlu0 %513 }
  0x90   : > { %v2969_v28 = vsel %vm560_vm2, 1.0, %v2825_v26  ;;  %vm558_vm3 = vcmp.eq.s32.totalorder %v2960_v21, %v514_v25  ;;  %vm807_vm2 = vcmask 23552  }
  0x91   : > { %v2976_v30 = vsel %vm558_vm3, 1.0, %v2825_v26  ;;  %v590_v31 = vpack.c.bf16 %v2969_v28, %v2966_v27  ;;  %vm838_vm3 = vcmask 48128  }
  0x92   : > { %v526_v32 = vpop.permute.xlu1 %525  ;;  %v589_v33 = vpack.c.bf16 %v2976_v30, %v2973_v29 }
  0x93   : > { %vm562_vm5 = vcmp.eq.s32.totalorder %v2960_v21, %v526_v32  ;;  %v523_v34 = vpop.permute.xlu0 %522 }
  0x94   : > { %v2984_v35 = vsel %vm562_vm5, 1.0, %v2825_v26  ;;  %vm561_vm6 = vcmp.eq.s32.totalorder %v2960_v21, %v523_v34  ;;  %2506 = vmatprep.mubr.msk.bf16.mxu0 %vm605_vm4, %v589_v33  ;;  %vm1115_vm5 = vcmask 31744  }
  0x95   : > { %v2989_v36 = vsel %vm561_vm6, 1.0, %v2825_v26  ;;  %2507 = vmatmul.mubr.msk.bf16.vlgmr.msra.gmra.mxu0 %vm605_vm4, %v590_v31  ;;  %vm1708_vm6 = vcmask 1040384  }
  0x96   : > { %v532_v37 = vpop.permute.xlu1 %531  ;;  %v591_v38 = vpack.c.bf16 %v2984_v35, %v2989_v36 }
  0x97   : > { %vm564_vm7 = vcmp.eq.s32.totalorder %v2960_v21, %v532_v37  ;;  %v529_v39 = vpop.permute.xlu0 %528 }
  0x98   : > { %v2996_v40 = vsel %vm564_vm7, 1.0, %v2825_v26  ;;  %vm563_vm8 = vcmp.eq.s32.totalorder %v2960_v21, %v529_v39  ;;  %2510 = vmatprep.mubr.msk.bf16.mxu0 %vm605_vm4, %v591_v38  ;;  %vm1709_vm7 = vcmask 1041408  }
  0x99   : > { %v3001_v41 = vsel %vm563_vm8, 1.0, %v2825_v26  ;;  %vm2829_vm8 = vmmov 0  }
  0x9a   : > { %v538_v42 = vpop.permute.xlu1 %537  ;;  %v592_v43 = vpack.c.bf16 %v2996_v40, %v3001_v41 }
  0x9b   : > { %vm566_vm9 = vcmp.eq.s32.totalorder %v2960_v21, %v538_v42  ;;  %v535_v44 = vpop.permute.xlu0 %534 }
  0x9c   : > { %v3007_v45 = vsel %vm566_vm9, 1.0, %v2825_v26  ;;  %vm565_vm10 = vcmp.eq.s32.totalorder %v2960_v21, %v535_v44  ;;  %vm1891_vm9 = vcmask 261120  }
  0x9d   : > { %v3011_v46 = vsel %vm565_vm10, 1.0, %v2825_v26  ;;  %2511 = vmatmul.mubr.msk.bf16.gmra.mxu0 %vm605_vm4, %v592_v43  ;;  %vm1894_vm10 = vcmask 523264  }
  0x9e   : > { %v544_v47 = vpop.permute.xlu1 %543  ;;  %v593_v48 = vpack.c.bf16 %v3007_v45, %v3011_v46 }
  0x9f   : > { %vm568_vm11 = vcmp.eq.s32.totalorder %v2960_v21, %v544_v47  ;;  %v541_v49 = vpop.permute.xlu0 %540 }
  0xa0   : > { %v3018_v50 = vsel %vm568_vm11, 1.0, %v2825_v26  ;;  %vm567_vm12 = vcmp.eq.s32.totalorder %v2960_v21, %v541_v49  ;;  %2514 = vmatprep.mubr.msk.bf16.mxu0 %vm605_vm4, %v593_v48  ;;  %vm1897_vm11 = vcmask 785408  }
  0xa1   : > { %v3023_v51 = vsel %vm567_vm12, 1.0, %v2825_v26 }
  0xa2   : > { %v550_v52 = vpop.permute.xlu1 %549  ;;  %v594_v53 = vpack.c.bf16 %v3018_v50, %v3023_v51 }
  0xa3   : > { %vm570_vm13 = vcmp.eq.s32.totalorder %v2960_v21, %v550_v52  ;;  %v547_v54 = vpop.permute.xlu0 %546 }
  0xa4   : > { %v3029_v55 = vsel %vm570_vm13, 1.0, %v2825_v26  ;;  %vm569_vm14 = vcmp.eq.s32.totalorder %v2960_v21, %v547_v54  ;;  %v600_v54 = vld [vmem:[%s3823_s4] sm:$0xff] }
  0xa5   : > { %v3033_v56 = vsel %vm569_vm14, 1.0, %v2825_v26  ;;  %2515 = vmatmul.mubr.msk.bf16.gmra.mxu0 %vm605_vm4, %v594_v53 }
  0xa6   : > { %v556_v57 = vpop.permute.xlu1 %555  ;;  %v595_v58 = vpack.c.bf16 %v3029_v55, %v3033_v56 }
  0xa7   : > { %vm572_vm15 = vcmp.eq.s32.totalorder %v2960_v21, %v556_v57  ;;  %v553_v59 = vpop.permute.xlu0 %552  ;;  %v601_v57 = vld [vmem:[%s3823_s4 + $0x8] sm:$0xff] }
  0xa8   : > { %v3040_v60 = vsel %vm572_vm15, 1.0, %v2825_v26  ;;  %vm571_vm0 = vcmp.eq.s32.totalorder %v2960_v21, %v553_v59  ;;  %2518 = vmatprep.mubr.msk.bf16.mxu1 %vm605_vm4, %v595_v58  ;;  %v602_v59 = vpack.c.bf16 %v601_v57, %v600_v54 }
  0xa9   : > { %v3045_v61 = vsel %vm571_vm0, 1.0, %v2825_v26 }
  0xaa   : > { %v596_v62 = vpack.c.bf16 %v3040_v60, %v3045_v61  ;;  %2540 = vmatprep.subr.bf16.mxu0 %v602_v59 }
  0xab   : > { %2541 = vmatpush3.bf16.msra.mxu0 %v602_v59 }
  0xac   : > { %2519 = vmatmul.mubr.msk.bf16.vlgmr.msra.gmra.mxu1 %vm605_vm4, %v596_v62  ;;  %2574 = vmatprep.subr.bf16.mxu0 %v2825_v26 }
  0xad   : > { %2523 = vmatpush3.bf16.msra.mxu1 %v865_v6 }
  0xae   : > { %2558 = vmatprep.subr.bf16.mxu1 %v2825_v26 }
 0x155   : > { %v2508_v4 = vpop.f32.mrf.mxu0 }
 0x156   : > { %v729_v9 = vsub.f32 %v2508_v4, %v2933_v2 }
 0x157   : > { %v664_v7 = vpop.f32.mrf.mxu0 }
 0x158   : > { %v727_v12 = vsub.f32 %v664_v7, %v2933_v2 }
 0x159   : > { %v2509_v8 = vpop.f32.mrf.mxu0 }
 0x15a   : > { %v730_v10 = vsub.f32 %v2509_v8, %v2935_v3 }
 0x15b   : > { %v667_v11 = vpop.f32.mrf.mxu0 }
 0x15c   : > { %v2653_v13 = vpack.i.bf16 %v730_v10, %v729_v9  ;;  %v728_v14 = vsub.f32 %v667_v11, %v2935_v3 }
 0x15d   : > { %v2512_v15 = vpop.f32.mrf.mxu0 }
 0x15e   : > { %v2648_v16 = vpack.i.bf16 %v728_v14, %v727_v12  ;;  %2654 = vrot.lane.b32.xlu1 %v2653_v13, %s2826_s25  ;;  %v733_v19 = vsub.f32 %v2512_v15, %v2933_v2 }
 0x15f   : > { %v680_v17 = vpop.f32.mrf.mxu0 }
 0x160   : > { %2649 = vrot.lane.b32.xlu0 %v2648_v16, %s2826_s25  ;;  %v731_v22 = vsub.f32 %v680_v17, %v2933_v2 }
 0x161   : > { %v2513_v18 = vpop.f32.mrf.mxu0 }
 0x162   : > { %v734_v20 = vsub.f32 %v2513_v18, %v2935_v3 }
 0x163   : > { %v683_v21 = vpop.f32.mrf.mxu0 }
 0x164   : > { %v2663_v23 = vpack.i.bf16 %v734_v20, %v733_v19  ;;  %v732_v24 = vsub.f32 %v683_v21, %v2935_v3 }
 0x165   : > { %v2516_v25 = vpop.f32.mrf.mxu0 }
 0x166   : > { %v2658_v31 = vpack.i.bf16 %v732_v24, %v731_v22  ;;  %2664 = vrot.lane.b32.xlu1 %v2663_v23, %s2826_s25  ;;  %v737_v34 = vsub.f32 %v2516_v25, %v2933_v2 }
 0x167   : > { %v696_v32 = vpop.f32.mrf.mxu0 }
 0x168   : > { %2659 = vrot.lane.b32.xlu0 %v2658_v31, %s2826_s25  ;;  %v735_v39 = vsub.f32 %v696_v32, %v2933_v2 }
 0x169   : > { %v2517_v33 = vpop.f32.mrf.mxu0 }
 0x16a   : > { %v738_v37 = vsub.f32 %v2517_v33, %v2935_v3 }
 0x16b   : > { %v699_v38 = vpop.f32.mrf.mxu0 }
 0x16c   : > { %v2673_v42 = vpack.i.bf16 %v738_v37, %v737_v34  ;;  %v736_v43 = vsub.f32 %v699_v38, %v2935_v3  ;;  %v2520_v44 = vpop.f32.mrf.mxu1 }
 0x16d   : > { %v741_v52 = vsub.f32 %v2520_v44, %v2933_v2 }
 0x16e   : > { %v2668_v47 = vpack.i.bf16 %v736_v43, %v735_v39  ;;  %v712_v48 = vpop.f32.mrf.mxu1  ;;  %2674 = vrot.lane.b32.xlu1 %v2673_v42, %s2826_s25 }
 0x16f   : > { %v739_v62 = vsub.f32 %v712_v48, %v2933_v2 }
 0x170   : > { %v2521_v49 = vpop.f32.mrf.mxu1  ;;  %2669 = vrot.lane.b32.xlu0 %v2668_v47, %s2826_s25 }
 0x171   : > { %v742_v53 = vsub.f32 %v2521_v49, %v2935_v3 }
 0x172   : > { %v715_v58 = vpop.f32.mrf.mxu1 }
 0x173   : > { %v2683_v63 = vpack.i.bf16 %v742_v53, %v741_v52  ;;  %v740_v1 = vsub.f32 %v715_v58, %v2935_v3 }
 0x175   : > { %v2678_v4 = vpack.i.bf16 %v740_v1, %v739_v62  ;;  %2684 = vrot.lane.b32.xlu1 %v2683_v63, %s2826_s25 }
 0x177   : > { %2679 = vrot.lane.b32.xlu0 %v2678_v4, %s2826_s25  ;;  %s2834_s25 = smov 96  }
 0x1d0   : > { %v2655_v6 = vpop.permute.xlu1 %2654 }
 0x1d1   : > { %v2657_v7 = vunpack.i.h.bf16 %v2655_v6  ;;  %v2656_v8 = vunpack.i.l.bf16 %v2655_v6 }
 0x1d2   : > { %v2650_v9 = vpop.permute.xlu0 %2649 }
 0x1d3   : > { %v2652_v10 = vunpack.i.h.bf16 %v2650_v9  ;;  %v2651_v11 = vunpack.i.l.bf16 %v2650_v9  ;;  %v811_v12 = vsel %vm807_vm2, %v2935_v3, %v2657_v7  ;;  %v810_v13 = vsel %vm807_vm2, %v2933_v2, %v2656_v8 }
 0x1d4   : > { %v825_v17 = vpack.c.bf16 %v811_v12, %v810_v13  ;;  %v2389_v13 = vld [vmem:[%s3822_s3] ss:$0 sm:$0xff] }
 0x1d5   : > { %v809_v14 = vsel %vm807_vm2, %v2935_v3, %v2652_v10  ;;  %v808_v15 = vsel %vm807_vm2, %v2933_v2, %v2651_v11 }
 0x1d6   : > { %v824_v16 = vpack.c.bf16 %v809_v14, %v808_v15 }
 0x1d8   : > { %2524 = vmatprep.mubr.msk.bf16.mxu1 %vm838_vm3, %v824_v16  ;;  %v2665_v18 = vpop.permute.xlu1 %2664 }
 0x1d9   : > { %v2667_v19 = vunpack.i.h.bf16 %v2665_v18  ;;  %v2666_v20 = vunpack.i.l.bf16 %v2665_v18  ;;  %2525 = vmatmul.mubr.msk.bf16.vlgmr.msra.gmra.mxu1 %vm838_vm3, %v825_v17 }
 0x1da   : > { %v2660_v21 = vpop.permute.xlu0 %2659 }
 0x1db   : > { %v2662_v22 = vunpack.i.h.bf16 %v2660_v21  ;;  %v2661_v23 = vunpack.i.l.bf16 %v2660_v21  ;;  %v815_v24 = vsel %vm807_vm2, %v2935_v3, %v2667_v19  ;;  %v814_v25 = vsel %vm807_vm2, %v2933_v2, %v2666_v20 }
 0x1dc   : > { %v827_v34 = vpack.c.bf16 %v815_v24, %v814_v25 }
 0x1dd   : > { %v813_v31 = vsel %vm807_vm2, %v2935_v3, %v2662_v22  ;;  %v812_v32 = vsel %vm807_vm2, %v2933_v2, %v2661_v23 }
 0x1de   : > { %v826_v33 = vpack.c.bf16 %v813_v31, %v812_v32 }
 0x1e0   : > { %2528 = vmatprep.mubr.msk.bf16.mxu1 %vm838_vm3, %v826_v33  ;;  %v2675_v37 = vpop.permute.xlu1 %2674 }
 0x1e1   : > { %v2677_v38 = vunpack.i.h.bf16 %v2675_v37  ;;  %v2676_v39 = vunpack.i.l.bf16 %v2675_v37  ;;  %2529 = vmatmul.mubr.msk.bf16.gmra.mxu1 %vm838_vm3, %v827_v34 }
 0x1e2   : > { %v2670_v42 = vpop.permute.xlu0 %2669 }
 0x1e3   : > { %v2672_v43 = vunpack.i.h.bf16 %v2670_v42  ;;  %v2671_v44 = vunpack.i.l.bf16 %v2670_v42  ;;  %v819_v47 = vsel %vm807_vm2, %v2935_v3, %v2677_v38  ;;  %v818_v48 = vsel %vm807_vm2, %v2933_v2, %v2676_v39 }
 0x1e4   : > { %v829_v57 = vpack.c.bf16 %v819_v47, %v818_v48 }
 0x1e5   : > { %v817_v49 = vsel %vm807_vm2, %v2935_v3, %v2672_v43  ;;  %v816_v52 = vsel %vm807_vm2, %v2933_v2, %v2671_v44 }
 0x1e6   : > { %v828_v53 = vpack.c.bf16 %v817_v49, %v816_v52 }
 0x1e7   : > { %v2685_v54 = vpop.permute.xlu1 %2684 }
 0x1e8   : > { %v2687_v58 = vunpack.i.h.bf16 %v2685_v54  ;;  %v2686_v59 = vunpack.i.l.bf16 %v2685_v54  ;;  %2532 = vmatprep.mubr.msk.bf16.mxu1 %vm838_vm3, %v828_v53 }
 0x1e9   : > { %v2680_v62 = vpop.permute.xlu0 %2679  ;;  %2533 = vmatmul.mubr.msk.bf16.gmra.mxu1 %vm838_vm3, %v829_v57 }
 0x1ea   : > { %v2682_v63 = vunpack.i.h.bf16 %v2680_v62  ;;  %v2681_v1 = vunpack.i.l.bf16 %v2680_v62  ;;  %v823_v4 = vsel %vm807_vm2, %v2935_v3, %v2687_v58  ;;  %v822_v6 = vsel %vm807_vm2, %v2933_v2, %v2686_v59 }
 0x1eb   : > { %v831_v10 = vpack.c.bf16 %v823_v4, %v822_v6 }
 0x1ec   : > { %v821_v7 = vsel %vm807_vm2, %v2935_v3, %v2682_v63  ;;  %v820_v8 = vsel %vm807_vm2, %v2933_v2, %v2681_v1 }
 0x1ed   : > { %v830_v9 = vpack.c.bf16 %v821_v7, %v820_v8 }
 0x1ef   : > { %2536 = vmatprep.mubr.msk.bf16.mxu1 %vm838_vm3, %v830_v9 }
 0x1f1   : > { %2537 = vmatmul.mubr.msk.bf16.gmra.mxu1 %vm838_vm3, %v831_v10 }
 0x1f2   : > { %2560 = vmatprep.mubr.msk.bf16.mxu1 %vm2829_vm8, %v2825_v26 }
 0x299   : > { %v2526_v11 = vpop.f32.mrf.mxu1 }
 0x29a   : > { %v910_v17 = vadd.f32 %v2526_v11, %v2389_v13 }
 0x29b   : > { %v901_v12 = vpop.f32.mrf.mxu1 }
 0x29c   : > { %v902_v15 = vadd.f32 %v2389_v13, %v901_v12  ;;  %v966_v22 = vmax.f32 %v910_v17, 0.0 }
 0x29d   : > { %v2527_v14 = vpop.f32.mrf.mxu1 }
 0x29e   : > { %v913_v16 = vadd.f32 %v2527_v14, %v2389_v13  ;;  %v964_v20 = vmax.f32 %v902_v15, 0.0 }
 0x29f   : > { %v904_v3 = vpop.f32.mrf.mxu1 }
 0x2a0   : > { %v905_v18 = vadd.f32 %v2389_v13, %v904_v3  ;;  %v967_v19 = vmax.f32 %v913_v16, 0.0 }
 0x2a1   : > { %v2530_v2 = vpop.f32.mrf.mxu1 }
 0x2a2   : > { %v965_v21 = vmax.f32 %v905_v18, 0.0  ;;  %v981_v25 = vpack.c.bf16 %v967_v19, %v966_v22  ;;  %v926_v34 = vadd.f32 %v2530_v2, %v2389_v13  ;;  %v2398_v22 = vld [vmem:[%s3824_s5] ss:$0 sm:$0xff] }
 0x2a3   : > { %v917_v23 = vpop.f32.mrf.mxu1 }
 0x2a4   : > { %v980_v24 = vpack.c.bf16 %v965_v21, %v964_v20  ;;  %v918_v32 = vadd.f32 %v2389_v13, %v917_v23  ;;  %v970_v47 = vmax.f32 %v926_v34, 0.0 }
 0x2a5   : > { %v2531_v31 = vpop.f32.mrf.mxu1 }
 0x2a6   : > { %v929_v33 = vadd.f32 %v2531_v31, %v2389_v13  ;;  %2542 = vmatprep.mubr.msk.bf16.mxu0 %vm605_vm4, %v980_v24  ;;  %v968_v43 = vmax.f32 %v918_v32, 0.0 }
 0x2a7   : > { %v920_v37 = vpop.f32.mrf.mxu1  ;;  %2543 = vmatmul.mubr.msk.bf16.vlgmr.msra.gmra.mxu0 %vm605_vm4, %v981_v25 }
 0x2a8   : > { %v921_v38 = vadd.f32 %v2389_v13, %v920_v37  ;;  %v971_v39 = vmax.f32 %v929_v33, 0.0 }
 0x2a9   : > { %v2534_v42 = vpop.f32.mrf.mxu1 }
 0x2aa   : > { %v969_v44 = vmax.f32 %v921_v38, 0.0  ;;  %v983_v52 = vpack.c.bf16 %v971_v39, %v970_v47  ;;  %v942_v58 = vadd.f32 %v2534_v42, %v2389_v13 }
 0x2ab   : > { %v933_v48 = vpop.f32.mrf.mxu1 }
 0x2ac   : > { %v982_v49 = vpack.c.bf16 %v969_v44, %v968_v43  ;;  %v934_v54 = vadd.f32 %v2389_v13, %v933_v48  ;;  %v974_v7 = vmax.f32 %v942_v58, 0.0 }
 0x2ad   : > { %v2535_v53 = vpop.f32.mrf.mxu1 }
 0x2ae   : > { %v945_v57 = vadd.f32 %v2535_v53, %v2389_v13  ;;  %2546 = vmatprep.mubr.msk.bf16.mxu0 %vm605_vm4, %v982_v49  ;;  %v972_v4 = vmax.f32 %v934_v54, 0.0 }
 0x2af   : > { %v936_v59 = vpop.f32.mrf.mxu1  ;;  %2547 = vmatmul.mubr.msk.bf16.gmra.mxu0 %vm605_vm4, %v983_v52 }
 0x2b0   : > { %v937_v62 = vadd.f32 %v2389_v13, %v936_v59  ;;  %v975_v63 = vmax.f32 %v945_v57, 0.0 }
 0x2b1   : > { %v2538_v1 = vpop.f32.mrf.mxu1 }
 0x2b2   : > { %v973_v6 = vmax.f32 %v937_v62, 0.0  ;;  %v985_v10 = vpack.c.bf16 %v975_v63, %v974_v7  ;;  %v958_v15 = vadd.f32 %v2538_v1, %v2389_v13 }
 0x2b3   : > { %v949_v8 = vpop.f32.mrf.mxu1 }
 0x2b4   : > { %v984_v9 = vpack.c.bf16 %v973_v6, %v972_v4  ;;  %v950_v12 = vadd.f32 %v2389_v13, %v949_v8  ;;  %v978_v2 = vmax.f32 %v958_v15, 0.0 }
 0x2b5   : > { %v2539_v11 = vpop.f32.mrf.mxu1 }
 0x2b6   : > { %v961_v14 = vadd.f32 %v2539_v11, %v2389_v13  ;;  %2550 = vmatprep.mubr.msk.bf16.mxu0 %vm605_vm4, %v984_v9  ;;  %v976_v18 = vmax.f32 %v950_v12, 0.0 }
 0x2b7   : > { %v952_v16 = vpop.f32.mrf.mxu1  ;;  %2551 = vmatmul.mubr.msk.bf16.gmra.mxu0 %vm605_vm4, %v985_v10 }
 0x2b8   : > { %v953_v17 = vadd.f32 %v2389_v13, %v952_v16  ;;  %v979_v3 = vmax.f32 %v961_v14, 0.0 }
 0x2ba   : > { %v977_v19 = vmax.f32 %v953_v17, 0.0  ;;  %v987_v21 = vpack.c.bf16 %v979_v3, %v978_v2 }
 0x2bc   : > { %v986_v20 = vpack.c.bf16 %v977_v19, %v976_v18 }
 0x2be   : > { %2554 = vmatprep.mubr.msk.bf16.mxu0 %vm605_vm4, %v986_v20 }
 0x2bf   : > { %2555 = vmatmul.mubr.msk.bf16.gmra.mxu0 %vm605_vm4, %v987_v21 }
 0x2c0   : > { %2590 = vmatprep.mubr.msk.bf16.mxu0 %vm2829_vm8, %v2825_v26 }
 0x367   : > { %v2544_v23 = vpop.f32.mrf.mxu0 }
 0x368   : > { %v3139_v24 = vadd.f32 %v2544_v23, %v2398_v22 }
 0x369   : > { %v1052_v25 = vpop.f32.mrf.mxu0 }
 0x36a   : > { %v3141_v13 = vadd.f32 %v2398_v22, %v1052_v25  ;;  %v1122_v31 = vsel %vm1115_vm5, %v3139_v24, -inf }
 0x36b   : > { %v2545_v32 = vpop.f32.mrf.mxu0  ;;  %1123 = vmax.xlane.f32.xlu0 %v1122_v31 }
 0x36c   : > { %v3145_v34 = vadd.f32 %v2545_v32, %v2398_v22  ;;  %v1116_v38 = vsel %vm1115_vm5, %v3141_v13, -inf }
 0x36d   : > { %v1055_v33 = vpop.f32.mrf.mxu0 }
 0x36e   : > { %v3147_v37 = vadd.f32 %v2398_v22, %v1055_v33  ;;  %v1125_v47 = vsel %vm1115_vm5, %v3145_v34, -inf }
 0x36f   : > { %v2548_v39 = vpop.f32.mrf.mxu0  ;;  %1117 = vmax.xlane.f32.xlu0 %v1116_v38 }
 0x370   : > { %v3151_v42 = vadd.f32 %v2548_v39, %v2398_v22  ;;  %v1119_v43 = vsel %vm1115_vm5, %v3147_v37, -inf }
 0x371   : > { %v1068_v44 = vpop.f32.mrf.mxu0  ;;  %1120 = vmax.xlane.f32.xlu1 %v1119_v43 }
 0x372   : > { %v3157_v49 = vadd.f32 %v2398_v22, %v1068_v44  ;;  %v1134_v53 = vsel %vm1115_vm5, %v3151_v42, -inf }
 0x373   : > { %v2549_v48 = vpop.f32.mrf.mxu0  ;;  %1126 = vmax.xlane.f32.xlu0 %v1125_v47 }
 0x374   : > { %v3159_v52 = vadd.f32 %v2549_v48, %v2398_v22  ;;  %v1128_v63 = vsel %vm1115_vm5, %v3157_v49, -inf }
 0x375   : > { %v1071_v54 = vpop.f32.mrf.mxu0  ;;  %1135 = vmax.xlane.f32.xlu1 %v1134_v53 }
 0x376   : > { %v3163_v57 = vadd.f32 %v2398_v22, %v1071_v54  ;;  %v1137_v58 = vsel %vm1115_vm5, %v3159_v52, -inf }
 0x377   : > { %1138 = vmax.xlane.f32.xlu0 %v1137_v58  ;;  %v2552_v59 = vpop.f32.mrf.mxu0 }
 0x378   : > { %v3167_v62 = vadd.f32 %v2552_v59, %v2398_v22  ;;  %v1131_v4 = vsel %vm1115_vm5, %v3163_v57, -inf }
 0x379   : > { %1129 = vmax.xlane.f32.xlu1 %v1128_v63  ;;  %v1084_v1 = vpop.f32.mrf.mxu0 }
 0x37a   : > { %v3173_v7 = vadd.f32 %v2398_v22, %v1084_v1  ;;  %v1146_v9 = vsel %vm1115_vm5, %v3167_v62, -inf }
 0x37b   : > { %1132 = vmax.xlane.f32.xlu0 %v1131_v4  ;;  %v2553_v6 = vpop.f32.mrf.mxu0 }
 0x37c   : > { %v3175_v8 = vadd.f32 %v2553_v6, %v2398_v22  ;;  %v1140_v16 = vsel %vm1115_vm5, %v3173_v7, -inf }
 0x37d   : > { %1147 = vmax.xlane.f32.xlu1 %v1146_v9  ;;  %v1087_v10 = vpop.f32.mrf.mxu0 }
 0x37e   : > { %v3179_v11 = vadd.f32 %v2398_v22, %v1087_v10  ;;  %v1149_v12 = vsel %vm1115_vm5, %v3175_v8, -inf }
 0x37f   : > { %1150 = vmax.xlane.f32.xlu0 %v1149_v12  ;;  %v2556_v14 = vpop.f32.mrf.mxu0 }
 0x380   : > { %v3183_v15 = vadd.f32 %v2556_v14, %v2398_v22  ;;  %v1143_v3 = vsel %vm1115_vm5, %v3179_v11, -inf }
 0x381   : > { %v1100_v17 = vpop.f32.mrf.mxu0  ;;  %1141 = vmax.xlane.f32.xlu1 %v1140_v16 }
 0x382   : > { %v3189_v19 = vadd.f32 %v2398_v22, %v1100_v17  ;;  %v1158_v20 = vsel %vm1115_vm5, %v3183_v15, -inf }
 0x383   : > { %v2557_v18 = vpop.f32.mrf.mxu0  ;;  %1144 = vmax.xlane.f32.xlu0 %v1143_v3 }
 0x384   : > { %v3191_v2 = vadd.f32 %v2557_v18, %v2398_v22  ;;  %v1152_v31 = vsel %vm1115_vm5, %v3189_v19, -inf }
 0x385   : > { %v1103_v21 = vpop.f32.mrf.mxu0  ;;  %1159 = vmax.xlane.f32.xlu1 %v1158_v20 }
 0x386   : > { %v3195_v23 = vadd.f32 %v2398_v22, %v1103_v21  ;;  %v1161_v25 = vsel %vm1115_vm5, %v3191_v2, -inf }
 0x387   : > { %1162 = vmax.xlane.f32.xlu0 %v1161_v25 }
 0x388   : > { %v1155_v32 = vsel %vm1115_vm5, %v3195_v23, -inf }
 0x389   : > { %1153 = vmax.xlane.f32.xlu1 %v1152_v31 }
 0x38b   : > { %1156 = vmax.xlane.f32.xlu0 %v1155_v32 }
 0x3f4   : > { %v1124_v33 = vpop.xlane.xlu0 %1123 }
 0x3f5   : > { %v1166_v38 = vsub.f32 %v3139_v24, %v1124_v33 }
 0x3f7   : > { %v1184_v39 = vmul.f32 1.442695, %v1166_v38 }
 0x3f8   : > { %v1118_v43 = vpop.xlane.xlu0 %1117 }
 0x3f9   : > { %2752 = vpow2.f32 %v1184_v39  ;;  %v1164_v22 = vsub.f32 %v3141_v13, %v1118_v43 }
 0x3fa   : > { %v1121_v44 = vpop.xlane.xlu1 %1120 }
 0x3fb   : > { %v1180_v47 = vmul.f32 1.442695, %v1164_v22  ;;  %v1165_v48 = vsub.f32 %v3147_v37, %v1121_v44 }
 0x3fc   : > { %v1127_v53 = vpop.xlane.xlu0 %1126 }
 0x3fd   : > { %2754 = vpow2.f32 %v1180_v47  ;;  %v1167_v54 = vsub.f32 %v3145_v34, %v1127_v53  ;;  %v1182_v58 = vmul.f32 1.442695, %v1165_v48 }
 0x3fe   : > { %v1136_v59 = vpop.xlane.xlu1 %1135 }
 0x3ff   : > { %v1186_v63 = vmul.f32 1.442695, %v1167_v54  ;;  %v1170_v1 = vsub.f32 %v3151_v42, %v1136_v59 }
 0x400   : > { %v1139_v4 = vpop.xlane.xlu0 %1138 }
 0x401   : > { %2756 = vpow2.f32 %v1186_v63  ;;  %v1192_v24 = vmul.f32 1.442695, %v1170_v1  ;;  %v1171_v6 = vsub.f32 %v3159_v52, %v1139_v4 }
 0x402   : > { %2758 = vpow2.f32 %v1182_v58  ;;  %v1130_v13 = vpop.xlane.xlu1 %1129 }
 0x403   : > { %2760 = vpow2.f32 %v1192_v24  ;;  %v1194_v9 = vmul.f32 1.442695, %v1171_v6  ;;  %v1168_v37 = vsub.f32 %v3157_v49, %v1130_v13 }
 0x404   : > { %v1133_v10 = vpop.xlane.xlu0 %1132 }
 0x405   : > { %v1188_v12 = vmul.f32 1.442695, %v1168_v37  ;;  %v1169_v34 = vsub.f32 %v3163_v57, %v1133_v10  ;;  %2762 = vpow2.f32 %v1194_v9 }
 0x406   : > { %v3211_v14 = vpop.eup %2752  ;;  %v1148_v16 = vpop.xlane.xlu1 %1147 }
 0x407   : > { %2764 = vpow2.f32 %v1188_v12  ;;  %v1190_v42 = vmul.f32 1.442695, %v1169_v34  ;;  %v1174_v17 = vsub.f32 %v3167_v62, %v1148_v16  ;;  %v1218_v52 = vsel %vm1115_vm5, %v3211_v14, 0.0 }
 0x408   : > { %v1151_v3 = vpop.xlane.xlu0 %1150  ;;  %1219 = vadd.xlane.f32.xlu1 %v1218_v52 }
 0x409   : > { %v1200_v18 = vmul.f32 1.442695, %v1174_v17  ;;  %v1175_v49 = vsub.f32 %v3175_v8, %v1151_v3  ;;  %2766 = vpow2.f32 %v1190_v42 }
 0x40a   : > { %v3217_v20 = vpop.eup %2754  ;;  %v1142_v57 = vpop.xlane.xlu1 %1141 }
 0x40b   : > { %2768 = vpow2.f32 %v1200_v18  ;;  %v1202_v21 = vmul.f32 1.442695, %v1175_v49  ;;  %v1172_v25 = vsub.f32 %v3173_v7, %v1142_v57  ;;  %v1212_v31 = vsel %vm1115_vm5, %v3217_v20, 0.0 }
 0x40c   : > { %v1145_v62 = vpop.xlane.xlu0 %1144  ;;  %1213 = vadd.xlane.f32.xlu1 %v1212_v31  ;;  %v2827_v18 = vmov 3  }
 0x40d   : > { %v1196_v32 = vmul.f32 1.442695, %v1172_v25  ;;  %v1173_v33 = vsub.f32 %v3179_v11, %v1145_v62  ;;  %2770 = vpow2.f32 %v1202_v21  ;;  %2690 = vset.pattern.permute.xlu0 %v2827_v18 }
 0x40e   : > { %v3223_v38 = vpop.eup %2756  ;;  %v1160_v8 = vpop.xlane.xlu1 %1159 }
 0x40f   : > { %v3225_v39 = vpop.eup %2758  ;;  %2772 = vpow2.f32 %v1196_v32  ;;  %v1198_v43 = vmul.f32 1.442695, %v1173_v33  ;;  %v1178_v22 = vsub.f32 %v3183_v15, %v1160_v8  ;;  %v1221_v7 = vsel %vm1115_vm5, %v3223_v38, 0.0  ;;  %v1696_v33 = vld [vmem:[%s3825_s6] sm:$0x7] }
 0x410   : > { %v3230_v44 = vpop.eup %2760  ;;  %1222 = vadd.xlane.f32.xlu0 %v1221_v7  ;;  %v1163_v47 = vpop.xlane.xlu0 %1162  ;;  %v1215_v63 = vsel %vm1115_vm5, %v3225_v39, 0.0  ;;  %v1697_v8 = vpack.c.bf16 %v1696_v33, %v1696_v33 }
 0x411   : > { %v1208_v48 = vmul.f32 1.442695, %v1178_v22  ;;  %v1179_v11 = vsub.f32 %v3191_v2, %v1163_v47  ;;  %v1230_v53 = vsel %vm1115_vm5, %v3230_v44, 0.0  ;;  %2774 = vpow2.f32 %v1198_v43 }
 0x412   : > { %1231 = vadd.xlane.f32.xlu1 %v1230_v53  ;;  %v1154_v54 = vpop.xlane.xlu1 %1153  ;;  %v3235_v58 = vpop.eup %2762  ;;  %v2828_v43 = vmov 65535  }
 0x413   : > { %2776 = vpow2.f32 %v1208_v48  ;;  %v1210_v15 = vmul.f32 1.442695, %v1179_v11  ;;  %v1176_v59 = vsub.f32 %v3189_v19, %v1154_v54  ;;  %v1233_v19 = vsel %vm1115_vm5, %v3235_v58, 0.0 }
 0x414   : > { %v3240_v1 = vpop.eup %2764  ;;  %1216 = vadd.xlane.f32.xlu0 %v1215_v63  ;;  %v1157_v4 = vpop.xlane.xlu0 %1156  ;;  %v1710_v22 = vsel %vm1708_vm6, 4294967295, %v2828_v43 }
 0x415   : > { %v1204_v2 = vmul.f32 1.442695, %v1176_v59  ;;  %v1177_v24 = vsub.f32 %v3195_v23, %v1157_v4  ;;  %v1224_v6 = vsel %vm1115_vm5, %v3240_v1, 0.0  ;;  %2778 = vpow2.f32 %v1210_v15 }
 0x416   : > { %1225 = vadd.xlane.f32.xlu1 %v1224_v6  ;;  %v3245_v13 = vpop.eup %2766  ;;  %v1711_v7 = vsel %vm1709_vm7, %v1710_v22, 0 }
 0x417   : > { %2780 = vpow2.f32 %v1204_v2  ;;  %v1206_v9 = vmul.f32 1.442695, %v1177_v24  ;;  %v1227_v12 = vsel %vm1115_vm5, %v3245_v13, 0.0  ;;  %v1713_v47 = vand.u32 %v1711_v7, %v1697_v8 }
 0x418   : > { %v3249_v37 = vpop.eup %2768  ;;  %1234 = vadd.xlane.f32.xlu0 %v1233_v19  ;;  %v2830_v2 = vmov 1   ;;  %v2831_v24 = vmov 2  }
 0x419   : > { %v1242_v10 = vsel %vm1115_vm5, %v3249_v37, 0.0  ;;  %2782 = vpow2.f32 %v1206_v9  ;;  %2559 = vmatpush3.bf16.msra.mxu1 %v1713_v47 }
 0x41a   : > { %1243 = vadd.xlane.f32.xlu1 %v1242_v10  ;;  %v3253_v23 = vpop.eup %2770 }
 0x41b   : > { %v1245_v17 = vsel %vm1115_vm5, %v3253_v23, 0.0 }
 0x41c   : > { %v3257_v34 = vpop.eup %2772  ;;  %1228 = vadd.xlane.f32.xlu0 %v1227_v12  ;;  %2561 = vmatmul.mubr.msk.bf16.vlgmr.msra.gmra.mxu1 %vm807_vm2, %v2940_v5 }
 0x41d   : > { %v1236_v16 = vsel %vm1115_vm5, %v3257_v34, 0.0 }
 0x41e   : > { %1237 = vadd.xlane.f32.xlu1 %v1236_v16  ;;  %v3261_v42 = vpop.eup %2774 }
 0x41f   : > { %v1239_v57 = vsel %vm1115_vm5, %v3261_v42, 0.0 }
 0x420   : > { %v3265_v52 = vpop.eup %2776  ;;  %1246 = vadd.xlane.f32.xlu0 %v1245_v17 }
 0x421   : > { %v1254_v3 = vsel %vm1115_vm5, %v3265_v52, 0.0 }
 0x422   : > { %1255 = vadd.xlane.f32.xlu1 %v1254_v3  ;;  %v3270_v49 = vpop.eup %2778 }
 0x423   : > { %v1257_v31 = vsel %vm1115_vm5, %v3270_v49, 0.0 }
 0x424   : > { %v3274_v21 = vpop.eup %2780  ;;  %1240 = vadd.xlane.f32.xlu0 %v1239_v57 }
 0x425   : > { %v1248_v25 = vsel %vm1115_vm5, %v3274_v21, 0.0 }
 0x426   : > { %1249 = vadd.xlane.f32.xlu1 %v1248_v25  ;;  %v3280_v62 = vpop.eup %2782 }
 0x427   : > { %v1251_v32 = vsel %vm1115_vm5, %v3280_v62, 0.0 }
 0x428   : > { %1258 = vadd.xlane.f32.xlu0 %v1257_v31 }
 0x42c   : > { %1252 = vadd.xlane.f32.xlu0 %v1251_v32 }
 0x491   : > { %v1220_v48 = vpop.xlane.xlu1 %1219 }
 0x492   : > { %2784 = vrcp.f32 %v1220_v48 }
 0x495   : > { %v1214_v11 = vpop.xlane.xlu1 %1213 }
 0x496   : > { %2786 = vrcp.f32 %v1214_v11 }
 0x499   : > { %v1223_v53 = vpop.xlane.xlu0 %1222 }
 0x49a   : > { %2788 = vrcp.f32 %v1223_v53 }
 0x49b   : > { %v1232_v5 = vpop.xlane.xlu1 %1231 }
 0x49d   : > { %v1217_v4 = vpop.xlane.xlu0 %1216 }
 0x49e   : > { %2790 = vrcp.f32 %v1217_v4 }
 0x49f   : > { %v2785_v54 = vpop.eup %2784  ;;  %2792 = vrcp.f32 %v1232_v5 }
 0x4a0   : > { %v1265_v15 = vmul.f32 %v2785_v54, %v3211_v14 }
 0x4a1   : > { %v1235_v6 = vpop.xlane.xlu0 %1234 }
 0x4a2   : > { %1609 = vperm.xlu0 %2690, %v1265_v15   ;;  %1308 = vperm.xlu1 %2647, %v1265_v15  }
 0x4a3   : > { %v2787_v59 = vpop.eup %2786 }
 0x4a4   : > { %v1261_v63 = vmul.f32 %v2787_v59, %v3217_v20 }
 0x4a5   : > { %v1229_v19 = vpop.xlane.xlu0 %1228 }
 0x4a6   : > { %2692 = vset.pattern.permute.xlu0 %v2830_v2  ;;  %2688 = vset.pattern.permute.xlu1 %v2830_v2  ;;  %2794 = vrcp.f32 %v1229_v19 }
 0x4a7   : > { %1417 = vperm.xlu1 %2688, %v1265_v15   ;;  %1405 = vperm.xlu0 %2692, %v1261_v63   ;;  %v2789_v14 = vpop.eup %2788 }
 0x4a8   : > { %v1267_v20 = vmul.f32 %v2789_v14, %v3223_v38  ;;  %v1226_v38 = vpop.xlane.xlu1 %1225 }
 0x4a9   : > { %2796 = vrcp.f32 %v1226_v38  ;;  %v1247_v57 = vpop.xlane.xlu0 %1246 }
 0x4ab   : > { %2689 = vset.pattern.permute.xlu1 %v2831_v24  ;;  %2693 = vset.pattern.permute.xlu0 %v2831_v24  ;;  %v2791_v9 = vpop.eup %2790 }
 0x4ac   : > { %1513 = vperm.xlu1 %2689, %v1265_v15   ;;  %1501 = vperm.xlu0 %2693, %v1261_v63   ;;  %v1263_v10 = vmul.f32 %v2791_v9, %v3225_v39  ;;  %v2793_v12 = vpop.eup %2792  ;;  %v1244_v17 = vpop.xlane.xlu1 %1243 }
 0x4ad   : > { %v1273_v16 = vmul.f32 %v2793_v12, %v3230_v44  ;;  %2798 = vrcp.f32 %v1244_v17  ;;  %v1241_v33 = vpop.xlane.xlu0 %1240 }
 0x4b0   : > { %2691 = vset.pattern.permute.xlu1 %v2824_v0  ;;  %2696 = vset.pattern.permute.xlu0 %v2830_v2  ;;  %v1238_v3 = vpop.xlane.xlu1 %1237 }
 0x4b1   : > { %1421 = vperm.xlu0 %2696, %v1267_v20   ;;  %1294 = vperm.xlu1 %2691, %v1261_v63   ;;  %2800 = vrcp.f32 %v1238_v3  ;;  %v1259_v48 = vpop.xlane.xlu0 %1258 }
 0x4b2   : > { %2802 = vrcp.f32 %v1247_v57 }
 0x4b3   : > { %v2795_v39 = vpop.eup %2794  ;;  %2804 = vrcp.f32 %v1235_v6 }
 0x4b4   : > { %v3314_v44 = vmul.f32 %v2795_v39, %v3245_v13  ;;  %2806 = vrcp.f32 %v1241_v33  ;;  %v1256_v8 = vpop.xlane.xlu1 %1255 }
 0x4b5   : > { %2697 = vset.pattern.permute.xlu0 %v2831_v24  ;;  %2694 = vset.pattern.permute.xlu1 %v2827_v18 }
 0x4b6   : > { %1517 = vperm.xlu0 %2697, %v1267_v20   ;;  %1597 = vperm.xlu1 %2694, %v1261_v63   ;;  %v2797_v25 = vpop.eup %2796 }
 0x4b7   : > { %v1269_v13 = vmul.f32 %v2797_v25, %v3240_v1 }
 0x4ba   : > { %2699 = vset.pattern.permute.xlu0 %v2824_v0  ;;  %2695 = vset.pattern.permute.xlu1 %v2824_v0  ;;  %v2799_v31 = vpop.eup %2798 }
 0x4bb   : > { %1299 = vperm.xlu0 %2699, %v1263_v10   ;;  %1313 = vperm.xlu1 %2695, %v1267_v20   ;;  %v3323_v32 = vmul.f32 %v2799_v31, %v3249_v37  ;;  %v1250_v37 = vpop.xlane.xlu1 %1249 }
 0x4bc   : > { %2808 = vrcp.f32 %v1250_v37 }
 0x4bd   : > { %2810 = vrcp.f32 %v1259_v48 }
 0x4be   : > { %v2801_v43 = vpop.eup %2800 }
 0x4bf   : > { %2698 = vset.pattern.permute.xlu1 %v2827_v18  ;;  %1336 = vperm.xlu0 %2699, %v1273_v16   ;;  %v3332_v1 = vmul.f32 %v2801_v43, %v3257_v34  ;;  %v2803_v22 = vpop.eup %2802 }
 0x4c0   : > { %1613 = vperm.xlu1 %2698, %v1267_v20   ;;  %v3338_v7 = vmul.f32 %v2803_v22, %v3253_v23  ;;  %v2805_v47 = vpop.eup %2804  ;;  %v1253_v23 = vpop.xlane.xlu0 %1252 }
 0x4c1   : > { %v2807_v34 = vpop.eup %2806  ;;  %v1275_v11 = vmul.f32 %v2805_v47, %v3235_v58  ;;  %2812 = vrcp.f32 %v1253_v23 }
 0x4c2   : > { %v3345_v53 = vmul.f32 %v2807_v34, %v3261_v42  ;;  %2814 = vrcp.f32 %v1256_v8 }
 0x4c3   : > { %2703 = vset.pattern.permute.xlu0 %v2830_v2 }
 0x4c4   : > { %2700 = vset.pattern.permute.xlu1 %v2830_v2  ;;  %1441 = vperm.xlu0 %2703, %v1273_v16  }
 0x4c5   : > { %1409 = vperm.xlu1 %2700, %v1263_v10  }
 0x4c8   : > { %2704 = vset.pattern.permute.xlu0 %v2831_v24 }
 0x4c9   : > { %2701 = vset.pattern.permute.xlu1 %v2831_v24  ;;  %1537 = vperm.xlu0 %2704, %v1273_v16   ;;  %v2809_v54 = vpop.eup %2808 }
 0x4ca   : > { %1505 = vperm.xlu1 %2701, %v1263_v10   ;;  %v3354_v58 = vmul.f32 %v2809_v54, %v3274_v21  ;;  %v2811_v42 = vpop.eup %2810 }
 0x4cb   : > { %v3363_v15 = vmul.f32 %v2811_v42, %v3270_v49 }
 0x4cd   : > { %2713 = vset.pattern.permute.xlu0 %v2824_v0 }
 0x4ce   : > { %2702 = vset.pattern.permute.xlu1 %v2827_v18  ;;  %1327 = vperm.xlu0 %2713, %v3314_v44   ;;  %v2813_v21 = vpop.eup %2812 }
 0x4cf   : > { %1601 = vperm.xlu1 %2702, %v1263_v10   ;;  %v3370_v59 = vmul.f32 %v2813_v21, %v3280_v62  ;;  %v2815_v49 = vpop.eup %2814 }
 0x4d0   : > { %v1289_v62 = vmul.f32 %v2815_v49, %v3265_v52 }
 0x4d2   : > { %2716 = vset.pattern.permute.xlu0 %v2827_v18 }
 0x4d3   : > { %1633 = vperm.xlu1 %2702, %v1273_v16   ;;  %1625 = vperm.xlu0 %2716, %v3314_v44  }
 0x4d7   : > { %2705 = vset.pattern.permute.xlu1 %v2824_v0  ;;  %2717 = vset.pattern.permute.xlu0 %v2824_v0 }
 0x4d8   : > { %1322 = vperm.xlu1 %2705, %v1269_v13   ;;  %1364 = vperm.xlu0 %2717, %v3323_v32  }
 0x4dc   : > { %2706 = vset.pattern.permute.xlu1 %v2830_v2  ;;  %2720 = vset.pattern.permute.xlu0 %v2827_v18  ;;  %v1749_v23 = vpop.f32.mrf.mxu1 }
 0x4dd   : > { %1429 = vperm.xlu1 %2706, %v1269_v13   ;;  %1657 = vperm.xlu0 %2720, %v3323_v32  }
 0x4de   : > { %v2562_v21 = vpop.f32.mrf.mxu1 }
 0x4e1   : > { %2707 = vset.pattern.permute.xlu1 %v2831_v24  ;;  %2723 = vset.pattern.permute.xlu0 %v2831_v24 }
 0x4e2   : > { %1525 = vperm.xlu1 %2707, %v1269_v13   ;;  %1549 = vperm.xlu0 %2723, %v3332_v1  }
 0x4e6   : > { %2708 = vset.pattern.permute.xlu1 %v2827_v18  ;;  %2726 = vset.pattern.permute.xlu0 %v2830_v2 }
 0x4e7   : > { %1621 = vperm.xlu1 %2708, %v1269_v13   ;;  %1469 = vperm.xlu0 %2726, %v3338_v7  }
 0x4eb   : > { %2709 = vset.pattern.permute.xlu1 %v2824_v0  ;;  %2729 = vset.pattern.permute.xlu0 %v2824_v0 }
 0x4ec   : > { %1341 = vperm.xlu1 %2709, %v1275_v11   ;;  %1355 = vperm.xlu0 %2729, %v3345_v53  }
 0x4f0   : > { %2710 = vset.pattern.permute.xlu1 %v2830_v2  ;;  %2732 = vset.pattern.permute.xlu0 %v2827_v18 }
 0x4f1   : > { %1445 = vperm.xlu1 %2710, %v1275_v11   ;;  %1649 = vperm.xlu0 %2732, %v3345_v53  }
 0x4f5   : > { %2711 = vset.pattern.permute.xlu1 %v2831_v24  ;;  %2737 = vset.pattern.permute.xlu0 %v2830_v2 }
 0x4f6   : > { %1541 = vperm.xlu1 %2711, %v1275_v11   ;;  %1477 = vperm.xlu0 %2737, %v3354_v58  }
 0x4fa   : > { %2712 = vset.pattern.permute.xlu1 %v2827_v18  ;;  %2738 = vset.pattern.permute.xlu0 %v2831_v24 }
 0x4fb   : > { %1637 = vperm.xlu1 %2712, %v1275_v11   ;;  %1573 = vperm.xlu0 %2738, %v3354_v58  }
 0x4ff   : > { %2714 = vset.pattern.permute.xlu1 %v2830_v2  ;;  %2741 = vset.pattern.permute.xlu0 %v2830_v2 }
 0x500   : > { %1433 = vperm.xlu1 %2714, %v3314_v44   ;;  %1493 = vperm.xlu0 %2741, %v3363_v15  }
 0x504   : > { %2715 = vset.pattern.permute.xlu1 %v2831_v24  ;;  %2742 = vset.pattern.permute.xlu0 %v2824_v0 }
 0x505   : > { %1529 = vperm.xlu1 %2715, %v3314_v44   ;;  %1383 = vperm.xlu0 %2742, %v3370_v59  }
 0x509   : > { %2718 = vset.pattern.permute.xlu1 %v2830_v2  ;;  %2745 = vset.pattern.permute.xlu0 %v2827_v18 }
 0x50a   : > { %1465 = vperm.xlu1 %2718, %v3323_v32   ;;  %1673 = vperm.xlu0 %2745, %v3370_v59  }
 0x50e   : > { %2719 = vset.pattern.permute.xlu1 %v2831_v24  ;;  %1681 = vperm.xlu0 %2745, %v1289_v62  }
 0x50f   : > { %1561 = vperm.xlu1 %2719, %v3323_v32  }
 0x513   : > { %2721 = vset.pattern.permute.xlu1 %v2824_v0 }
 0x514   : > { %1350 = vperm.xlu1 %2721, %v3332_v1  }
 0x518   : > { %2722 = vset.pattern.permute.xlu1 %v2830_v2 }
 0x519   : > { %1453 = vperm.xlu1 %2722, %v3332_v1  }
 0x51d   : > { %v1610_v63 = vpop.permute.xlu0 %1609  ;;  %2724 = vset.pattern.permute.xlu1 %v2827_v18  ;;  %v1309_v4 = vpop.permute.xlu1 %1308 }
 0x51e   : > { %1645 = vperm.xlu1 %2724, %v3332_v1   ;;  %v1616_v39 = vmul.f32 %v1610_v63, %v2966_v27 }
 0x522   : > { %v1406_v52 = vpop.permute.xlu0 %1405  ;;  %2725 = vset.pattern.permute.xlu1 %v2824_v0  ;;  %v1418_v5 = vpop.permute.xlu1 %1417 }
 0x523   : > { %v1412_v14 = vmul.f32 %v1406_v52, %v2973_v29  ;;  %v1424_v20 = vmul.f32 %v1418_v5, %v2966_v27  ;;  %1369 = vperm.xlu1 %2725, %v3338_v7   ;;  %v1752_v52 = vpop.f32.mrf.mxu1  ;;  %v1316_v5 = vmul.f32 %v1309_v4, %v2966_v27 }
 0x525   : > { %v3393_v6 = vadd.f32 %v1424_v20, %v1412_v14 }
 0x527   : > { %v1502_v9 = vpop.permute.xlu0 %1501  ;;  %2727 = vset.pattern.permute.xlu1 %v2831_v24  ;;  %v1514_v19 = vpop.permute.xlu1 %1513 }
 0x528   : > { %v1508_v10 = vmul.f32 %v1502_v9, %v2973_v29  ;;  %v1520_v12 = vmul.f32 %v1514_v19, %v2966_v27  ;;  %1565 = vperm.xlu1 %2727, %v3338_v7  }
 0x52a   : > { %v3399_v38 = vadd.f32 %v1520_v12, %v1508_v10 }
 0x52c   : > { %2728 = vset.pattern.permute.xlu1 %v2827_v18  ;;  %v1295_v16 = vpop.permute.xlu1 %1294  ;;  %v1422_v31 = vpop.permute.xlu0 %1421 }
 0x52d   : > { %1661 = vperm.xlu1 %2728, %v3338_v7   ;;  %v1425_v32 = vmul.f32 %v1422_v31, %v2969_v28  ;;  %v1302_v49 = vmul.f32 %v1295_v16, %v2973_v29 }
 0x52f   : > { %v1318_v19 = vadd.f32 %v1316_v5, %v1302_v49 }
 0x531   : > { %2730 = vset.pattern.permute.xlu1 %v2830_v2  ;;  %v1598_v17 = vpop.permute.xlu1 %1597  ;;  %v1518_v8 = vpop.permute.xlu0 %1517 }
 0x532   : > { %v1604_v44 = vmul.f32 %v1598_v17, %v2973_v29  ;;  %1457 = vperm.xlu1 %2730, %v3345_v53   ;;  %v1521_v37 = vmul.f32 %v1518_v8, %v2969_v28  ;;  %v2563_v29 = vpop.f32.mrf.mxu1 }
 0x534   : > { %v3407_v3 = vadd.f32 %v1616_v39, %v1604_v44 }
 0x536   : > { %2731 = vset.pattern.permute.xlu1 %v2831_v24  ;;  %v3410_v57 = vpop.permute.xlu1 %1313  ;;  %v1300_v47 = vpop.permute.xlu0 %1299 }
 0x537   : > { %1553 = vperm.xlu1 %2731, %v3345_v53  }
 0x53a   : > { %v3428_v42 = vpop.permute.xlu0 %1336 }
 0x53b   : > { %2733 = vset.pattern.permute.xlu1 %v2824_v0  ;;  %v1614_v25 = vpop.permute.xlu1 %1613 }
 0x53c   : > { %1392 = vperm.xlu1 %2733, %v1289_v62   ;;  %v1617_v48 = vmul.f32 %v1614_v25, %v2969_v28 }
 0x540   : > { %2734 = vset.pattern.permute.xlu1 %v2830_v2  ;;  %v1410_v13 = vpop.permute.xlu1 %1409 }
 0x541   : > { %v1413_v33 = vmul.f32 %v1410_v13, %v2976_v30  ;;  %1489 = vperm.xlu1 %2734, %v1289_v62   ;;  %v1303_v13 = vmul.f32 %v1300_v47, %v2976_v30 }
 0x543   : > { %v3417_v43 = vadd.f32 %v1425_v32, %v1413_v33  ;;  %v1317_v32 = vmul.f32 %v3410_v57, %v2969_v28 }
 0x545   : > { %2735 = vset.pattern.permute.xlu1 %v2831_v24  ;;  %v1506_v1 = vpop.permute.xlu1 %1505 }
 0x546   : > { %v1509_v22 = vmul.f32 %v1506_v1, %v2976_v30  ;;  %1585 = vperm.xlu1 %2735, %v1289_v62   ;;  %v2407_v62 = vld [vmem:[%s3826_s7] ss:$0 sm:$0xff] }
 0x547   : > { %v3436_v63 = vadd.f32 %v2407_v62, %v1749_v23  ;;  %v3440_v9 = vadd.f32 %v2407_v62, %v1752_v52 }
 0x548   : > { %v3422_v7 = vadd.f32 %v1521_v37, %v1509_v22  ;;  %v1319_v37 = vadd.f32 %v1317_v32, %v1303_v13 }
 0x549   : > { %v1756_v20 = vmax.f32 %v3436_v63, 0.0  ;;  %v1757_v12 = vmax.f32 %v3440_v9, 0.0 }
 0x54a   : > { %2736 = vset.pattern.permute.xlu1 %v2824_v0  ;;  %v1602_v34 = vpop.permute.xlu1 %1601 }
 0x54b   : > { %v1605_v11 = vmul.f32 %v1602_v34, %v2976_v30  ;;  %1378 = vperm.xlu1 %2736, %v3354_v58   ;;  %v3454_v27 = vpack.c.bf16 %v1757_v12, %v1756_v20 }
 0x54d   : > { %v1619_v53 = vadd.f32 %v1617_v48, %v1605_v11  ;;  %2564 = vmatprep.subr.bf16.mxu1 %v3454_v27 }
 0x54e   : > { %v1634_v54 = vpop.permute.xlu1 %1633  ;;  %2565 = vmatpush3.bf16.msra.mxu1 %v3454_v27 }
 0x54f   : > { %2739 = vset.pattern.permute.xlu1 %v2827_v18  ;;  %2594 = vmatprep.subr.bf16.mxu1 %v2825_v26  ;;  %v1640_v1 = vmul.f32 %v1634_v54, %v3001_v41 }
 0x550   : > { %1669 = vperm.xlu1 %2739, %v3354_v58   ;;  %v3444_v58 = vpop.permute.xlu0 %1441 }
 0x553   : > { %v1323_v14 = vpop.permute.xlu1 %1322 }
 0x554   : > { %v1330_v10 = vmul.f32 %v1323_v14, %v2989_v36  ;;  %2740 = vset.pattern.permute.xlu1 %v2824_v0  ;;  %v1538_v0 = vpop.permute.xlu0 %1537 }
 0x555   : > { %1397 = vperm.xlu1 %2740, %v3363_v15  }
 0x556   : > { %v3448_v16 = vadd.f32 %v1330_v10, %v1318_v19  ;;  %v1544_v10 = vmul.f32 %v1538_v0, %v3001_v41 }
 0x558   : > { %v1430_v4 = vpop.permute.xlu1 %1429  ;;  %v1328_v31 = vpop.permute.xlu0 %1327 }
 0x559   : > { %v1436_v17 = vmul.f32 %v1430_v4, %v2989_v36  ;;  %2743 = vset.pattern.permute.xlu1 %v2830_v2  ;;  %v1331_v8 = vmul.f32 %v1328_v31, %v2984_v35 }
 0x55a   : > { %1481 = vperm.xlu1 %2743, %v3370_v59  }
 0x55b   : > { %v3462_v39 = vadd.f32 %v1436_v17, %v3393_v6  ;;  %v1333_v30 = vadd.f32 %v1331_v8, %v1319_v37 }
 0x55d   : > { %v1526_v44 = vpop.permute.xlu1 %1525 }
 0x55e   : > { %v1532_v25 = vmul.f32 %v1526_v44, %v2989_v36  ;;  %2744 = vset.pattern.permute.xlu1 %v2831_v24 }
 0x55f   : > { %1589 = vperm.xlu1 %2744, %v3363_v15  }
 0x560   : > { %v1534_v2 = vadd.f32 %v1532_v25, %v3399_v38 }
 0x562   : > { %v1622_v33 = vpop.permute.xlu1 %1621  ;;  %v1546_v44 = vadd.f32 %v1544_v10, %v1534_v2 }
 0x563   : > { %v1628_v6 = vmul.f32 %v1622_v33, %v2989_v36  ;;  %1577 = vperm.xlu1 %2744, %v3370_v59   ;;  %v1626_v59 = vpop.permute.xlu0 %1625 }
 0x564   : > { %v1629_v34 = vmul.f32 %v1626_v59, %v2984_v35 }
 0x565   : > { %v1630_v24 = vadd.f32 %v1628_v6, %v3407_v3 }
 0x566   : > { %v1631_v11 = vadd.f32 %v1629_v34, %v1619_v53 }
 0x567   : > { %2746 = vset.pattern.permute.xlu1 %v2827_v18  ;;  %v1342_v38 = vpop.permute.xlu1 %1341  ;;  %v3478_v22 = vadd.f32 %v1640_v1, %v1630_v24  ;;  %v1365_v18 = vpop.permute.xlu0 %1364 }
 0x568   : > { %v1345_v28 = vmul.f32 %v1342_v38, %v2996_v40  ;;  %1685 = vperm.xlu1 %2746, %v3363_v15  }
 0x56a   : > { %v1347_v36 = vadd.f32 %v1345_v28, %v1333_v30 }
 0x56b   : > { %v3489_v62 = vpop.permute.xlu0 %1657 }
 0x56c   : > { %v1446_v57 = vpop.permute.xlu1 %1445 }
 0x56d   : > { %v1449_v49 = vmul.f32 %v1446_v57, %v2996_v40 }
 0x56f   : > { %v1550_v17 = vpop.permute.xlu0 %1549 }
 0x570   : > { %v1556_v25 = vmul.f32 %v1550_v17, %v3011_v46 }
 0x571   : > { %v1542_v47 = vpop.permute.xlu1 %1541 }
 0x572   : > { %v1545_v53 = vmul.f32 %v1542_v47, %v2996_v40  ;;  %v1558_v31 = vadd.f32 %v1556_v25, %v1546_v44  ;;  %v1344_v47 = vmul.f32 %v3428_v42, %v3001_v41  ;;  %v1448_v42 = vmul.f32 %v3444_v58, %v3001_v41 }
 0x573   : > { %v1470_v0 = vpop.permute.xlu0 %1469 }
 0x576   : > { %v1638_v48 = vpop.permute.xlu1 %1637 }
 0x577   : > { %v1641_v3 = vmul.f32 %v1638_v48, %v2996_v40  ;;  %v1356_v24 = vpop.permute.xlu0 %1355 }
 0x579   : > { %v3484_v23 = vadd.f32 %v1641_v3, %v1631_v11  ;;  %v1346_v3 = vadd.f32 %v1344_v47, %v3448_v16  ;;  %v1450_v16 = vadd.f32 %v1448_v42, %v3462_v39  ;;  %v1473_v47 = vmul.f32 %v1470_v0, %v3018_v50 }
 0x57b   : > { %v1434_v54 = vpop.permute.xlu1 %1433  ;;  %v1650_v37 = vpop.permute.xlu0 %1649 }
 0x57c   : > { %v1437_v21 = vmul.f32 %v1434_v54, %v2984_v35  ;;  %v1359_v54 = vmul.f32 %v1356_v24, %v3007_v45 }
 0x57e   : > { %v1439_v15 = vadd.f32 %v1437_v21, %v3417_v43 }
 0x57f   : > { %v1478_v30 = vpop.permute.xlu0 %1477 }
 0x580   : > { %v1530_v52 = vpop.permute.xlu1 %1529  ;;  %v1451_v5 = vadd.f32 %v1449_v49, %v1439_v15  ;;  %v1372_v15 = vmul.f32 %v1365_v18, %v3023_v51 }
 0x581   : > { %v1533_v14 = vmul.f32 %v1530_v52, %v2984_v35  ;;  %v1361_v52 = vadd.f32 %v1359_v54, %v1347_v36 }
 0x583   : > { %v1535_v19 = vadd.f32 %v1533_v14, %v3422_v7  ;;  %v3505_v57 = vpop.permute.xlu0 %1573 }
 0x585   : > { %v1466_v29 = vpop.permute.xlu1 %1465  ;;  %v3495_v4 = vadd.f32 %v1545_v53, %v1535_v19 }
 0x586   : > { %v1472_v41 = vmul.f32 %v1466_v29, %v3023_v51 }
 0x587   : > { %v1494_v48 = vpop.permute.xlu0 %1493 }
 0x58a   : > { %v1562_v43 = vpop.permute.xlu1 %1561 }
 0x58b   : > { %v1568_v13 = vmul.f32 %v1562_v43, %v3023_v51  ;;  %v1384_v19 = vpop.permute.xlu0 %1383 }
 0x58c   : > { %v1387_v43 = vmul.f32 %v1384_v19, %v3029_v55 }
 0x58d   : > { %v3499_v32 = vadd.f32 %v1568_v13, %v1558_v31 }
 0x58f   : > { %v1351_v35 = vpop.permute.xlu1 %1350 }
 0x590   : > { %v1358_v34 = vmul.f32 %v1351_v35, %v3011_v46 }
 0x592   : > { %v1360_v21 = vadd.f32 %v1358_v34, %v1346_v3 }
 0x594   : > { %v1454_v33 = vpop.permute.xlu1 %1453  ;;  %v1374_v44 = vadd.f32 %v1372_v15, %v1360_v21 }
 0x595   : > { %v1460_v10 = vmul.f32 %v1454_v33, %v3011_v46 }
 0x597   : > { %v1462_v18 = vadd.f32 %v1460_v10, %v1450_v16  ;;  %v1664_v16 = vmul.f32 %v3489_v62, %v3023_v51 }
 0x599   : > { %v1646_v40 = vpop.permute.xlu1 %1645  ;;  %v1474_v39 = vadd.f32 %v1472_v41, %v1462_v18 }
 0x59a   : > { %v1652_v29 = vmul.f32 %v1646_v40, %v3011_v46  ;;  %v1758_v46 = vld [vmem:[%s3827_s8] sm:$0xff]  ;;  %v1759_v40 = vld [vmem:[%s3827_s8 + $0x8] sm:$0xff] }
 0x59c   : > { %v1654_v10 = vadd.f32 %v1652_v29, %v3478_v22  ;;  %v1762_v22 = vpack.c.bf16 %v1759_v40, %v1758_v46  ;;  %v1765_v46 = vld [vmem:[%s3828_s9 + $0x8] sm:$0xff] }
 0x59e   : > { %v1370_v6 = vpop.permute.xlu1 %1369  ;;  %v1666_v62 = vadd.f32 %v1664_v16, %v1654_v10 }
 0x59f   : > { %v1373_v49 = vmul.f32 %v1370_v6, %v3018_v50 }
 0x5a1   : > { %v1375_v17 = vadd.f32 %v1373_v49, %v1361_v52 }
 0x5a3   : > { %v3501_v7 = vpop.permute.xlu1 %1565  ;;  %v1389_v35 = vadd.f32 %v1387_v43, %v1375_v17 }
 0x5a8   : > { %v3503_v8 = vpop.permute.xlu1 %1661 }
 0x5a9   : > { %v1665_v17 = vmul.f32 %v3503_v8, %v3018_v50  ;;  %v1580_v8 = vmul.f32 %v3505_v57, %v3033_v56 }
 0x5ad   : > { %v1458_v1 = vpop.permute.xlu1 %1457 }
 0x5ae   : > { %v1461_v25 = vmul.f32 %v1458_v1, %v3007_v45 }
 0x5b0   : > { %v1463_v58 = vadd.f32 %v1461_v25, %v1451_v5  ;;  %v1497_v5 = vmul.f32 %v1494_v48, %v3040_v60  ;;  %v1653_v48 = vmul.f32 %v1650_v37, %v3007_v45 }
 0x5b2   : > { %v1554_v2 = vpop.permute.xlu1 %1553  ;;  %v1475_v54 = vadd.f32 %v1473_v47, %v1463_v58  ;;  %v1655_v25 = vadd.f32 %v1653_v48, %v3484_v23  ;;  %v1776_v47 = vld [vmem:[%s3828_s9 + $0x60] sm:$0xff] }
 0x5b3   : > { %v1557_v21 = vmul.f32 %v1554_v2, %v3007_v45 }
 0x5b4   : > { %v1667_v51 = vadd.f32 %v1665_v17, %v1655_v25 }
 0x5b5   : > { %v1559_v42 = vadd.f32 %v1557_v21, %v3495_v4  ;;  %v1569_v4 = vmul.f32 %v3501_v7, %v3018_v50  ;;  %v1582_v7 = vadd.f32 %v1580_v8, %v3499_v32  ;;  %v1770_v21 = vld [vmem:[%s3828_s9 + $0x30] sm:$0xff] }
 0x5b7   : > { %v1393_v38 = vpop.permute.xlu1 %1392 }
 0x5b8   : > { %v1400_v13 = vmul.f32 %v1393_v38, %v3045_v61 }
 0x5bc   : > { %v1490_v28 = vpop.permute.xlu1 %1489 }
 0x5bd   : > { %v1496_v3 = vmul.f32 %v1490_v28, %v3045_v61  ;;  %v1761_v28 = vld [vmem:[%s3827_s8 + $0x18] sm:$0xff] }
 0x5c1   : > { %v3507_v59 = vpop.permute.xlu1 %1585 }
 0x5c2   : > { %v1592_v37 = vmul.f32 %v3507_v59, %v3045_v61 }
 0x5c4   : > { %v1594_v57 = vadd.f32 %v1592_v37, %v1582_v7 }
 0x5c6   : > { %v1379_v11 = vpop.permute.xlu1 %1378 }
 0x5c7   : > { %v1386_v14 = vmul.f32 %v1379_v11, %v3033_v56  ;;  %v1484_v11 = vmul.f32 %v1478_v30, %v3033_v56  ;;  %v1760_v30 = vld [vmem:[%s3827_s8 + $0x10] sm:$0xff] }
 0x5c8   : > { %v1763_v19 = vpack.c.bf16 %v1761_v28, %v1760_v30  ;;  %v1769_v30 = vld [vmem:[%s3828_s9 + $0x28] sm:$0xff] }
 0x5c9   : > { %v1388_v31 = vadd.f32 %v1386_v14, %v1374_v44  ;;  %v1486_v0 = vadd.f32 %v1484_v11, %v1474_v39  ;;  %v1674_v14 = vpop.permute.xlu0 %1673 }
 0x5cb   : > { %v1670_v53 = vpop.permute.xlu1 %1669  ;;  %v1402_v33 = vadd.f32 %v1400_v13, %v1388_v31  ;;  %v1498_v15 = vadd.f32 %v1496_v3, %v1486_v0  ;;  %v1571_v31 = vadd.f32 %v1569_v4, %v1559_v42  ;;  %v1772_v3 = vld [vmem:[%s3828_s9 + $0x40] sm:$0xff] }
 0x5cc   : > { %v1676_v43 = vmul.f32 %v1670_v53, %v3033_v56 }
 0x5cd   : > { %v1682_v23 = vpop.permute.xlu0 %1681 }
 0x5ce   : > { %v1678_v56 = vadd.f32 %v1676_v43, %v1666_v62 }
 0x5d0   : > { %v1398_v36 = vpop.permute.xlu1 %1397 }
 0x5d1   : > { %v1401_v6 = vmul.f32 %v1398_v36, %v3040_v60  ;;  %v1677_v36 = vmul.f32 %v1674_v14, %v3029_v55  ;;  %v1767_v14 = vld [vmem:[%s3828_s9 + $0x18] sm:$0xff] }
 0x5d3   : > { %v1403_v24 = vadd.f32 %v1401_v6, %v1389_v35  ;;  %v1688_v35 = vmul.f32 %v1682_v23, %v3045_v61  ;;  %v1679_v6 = vadd.f32 %v1677_v36, %v1667_v51 }
 0x5d5   : > { %v3527_v34 = vpack.c.bf16 %v1403_v24, %v1402_v33  ;;  %v1482_v1 = vpop.permute.xlu1 %1481  ;;  %v1690_v33 = vadd.f32 %v1688_v35, %v1678_v56  ;;  %v2414_v35 = vld [vmem:[%s3829_s10] ss:$0 sm:$0xff] }
 0x5d6   : > { %v1485_v38 = vmul.f32 %v1482_v1, %v3029_v55  ;;  %v1775_v1 = vld [vmem:[%s3828_s9 + $0x58] sm:$0xff] }
 0x5d7   : > { %2566 = vmatprep.mubr.msk.bf16.mxu1 %vm605_vm4, %v3527_v34 }
 0x5d8   : > { %v1487_v49 = vadd.f32 %v1485_v38, %v1475_v54  ;;  %v1773_v54 = vld [vmem:[%s3828_s9 + $0x48] sm:$0xff] }
 0x5d9   : > { %v1784_v38 = vpack.c.bf16 %v1773_v54, %v1772_v3 }
 0x5da   : > { %v1499_v52 = vadd.f32 %v1497_v5, %v1487_v49  ;;  %v1590_v2 = vpop.permute.xlu1 %1589  ;;  %v1771_v5 = vld [vmem:[%s3828_s9 + $0x38] sm:$0xff]  ;;  %v1768_v49 = vld [vmem:[%s3828_s9 + $0x20] sm:$0xff] }
 0x5db   : > { %v1593_v53 = vmul.f32 %v1590_v2, %v3040_v60  ;;  %v1783_v29 = vpack.c.bf16 %v1771_v5, %v1770_v21  ;;  %v1766_v2 = vld [vmem:[%s3828_s9 + $0x10] sm:$0xff] }
 0x5dc   : > { %v3554_v44 = vpack.c.bf16 %v1499_v52, %v1498_v15  ;;  %v1782_v15 = vpack.c.bf16 %v1769_v30, %v1768_v49  ;;  %v1781_v42 = vpack.c.bf16 %v1767_v14, %v1766_v2  ;;  %v2007_v2 = vld [vmem:[%s3830_s11 + $0x38] sm:$0xff] }
 0x5de   : > { %2567 = vmatmul.mubr.msk.bf16.vlgmr.msra.gmra.mxu1 %vm605_vm4, %v3554_v44  ;;  %v1578_v45 = vpop.permute.xlu1 %1577 }
 0x5df   : > { %v1581_v50 = vmul.f32 %v1578_v45, %v3029_v55  ;;  %2595 = vmatpush3.bf16.msra.mxu1 %v1763_v19  ;;  %v1778_v55 = vld [vmem:[%s3828_s9 + $0x70] sm:$0xff]  ;;  %v1764_v19 = vld [vmem:[%s3828_s9] sm:$0xff] }
 0x5e0   : > { %2596 = vmatprep.subr.bf16.mxu1 %v2825_v26  ;;  %v1780_v48 = vpack.c.bf16 %v1765_v46, %v1764_v19  ;;  %v2005_v19 = vld [vmem:[%s3830_s11 + $0x28] sm:$0xff] }
 0x5e1   : > { %v1583_v18 = vadd.f32 %v1581_v50, %v1571_v31 }
 0x5e3   : > { %v1595_v13 = vadd.f32 %v1593_v53, %v1583_v18  ;;  %v1686_v59 = vpop.permute.xlu1 %1685  ;;  %2597 = vmatpush3.bf16.msra.mxu1 %v1762_v22 }
 0x5e4   : > { %v1689_v41 = vmul.f32 %v1686_v59, %v3040_v60  ;;  %v1779_v60 = vld [vmem:[%s3828_s9 + $0x78] sm:$0xff] }
 0x5e5   : > { %v3575_v58 = vpack.c.bf16 %v1595_v13, %v1594_v57  ;;  %v1787_v61 = vpack.c.bf16 %v1779_v60, %v1778_v55 }
 0x5e6   : > { %v1691_v24 = vadd.f32 %v1689_v41, %v1679_v6 }
 0x5e7   : > { %2570 = vmatprep.mubr.msk.bf16.mxu1 %vm605_vm4, %v3575_v58  ;;  %2575 = vmatpush3.bf16.msra.mxu0 %v1787_v61 }
 0x5e8   : > { %v3579_v32 = vpack.c.bf16 %v1691_v24, %v1690_v33  ;;  %2576 = vmatprep.subr.bf16.mxu0 %v2825_v26 }
 0x5ea   : > { %2571 = vmatmul.mubr.msk.bf16.gmra.mxu1 %vm605_vm4, %v3579_v32 }
 0x5eb   : > { %2598 = vmatprep.mubr.msk.bf16.mxu1 %vm2829_vm8, %v2825_v26 }
 0x5f2   : > { %2599 = vmatmul.mubr.msk.bf16.vlgmr.msra.gmra.mxu1 %vm1891_vm9, %v3454_v27  ;;  %v1777_v27 = vld [vmem:[%s3828_s9 + $0x68] sm:$0xff] }
 0x5f3   : > { %2604 = vmatprep.mubr.msk.bf16.mxu1 %vm605_vm4, %v3527_v34  ;;  %v1786_v39 = vpack.c.bf16 %v1777_v27, %v1776_v47  ;;  %v1774_v34 = vld [vmem:[%s3828_s9 + $0x50] sm:$0xff] }
 0x5f4   : > { %v1785_v11 = vpack.c.bf16 %v1775_v1, %v1774_v34 }
 0x5f5   : > { %2577 = vmatpush3.bf16.msra.mxu0 %v1786_v39 }
 0x5f6   : > { %2578 = vmatprep.subr.bf16.mxu0 %v2825_v26 }
 0x5f9   : > { %2579 = vmatpush3.bf16.msra.mxu0 %v1785_v11 }
 0x5fa   : > { %2580 = vmatprep.subr.bf16.mxu0 %v2825_v26 }
 0x5fd   : > { %2581 = vmatpush3.bf16.msra.mxu0 %v1784_v38 }
 0x5fe   : > { %2582 = vmatprep.subr.bf16.mxu0 %v2825_v26 }
 0x601   : > { %2583 = vmatpush3.bf16.msra.mxu0 %v1783_v29 }
 0x602   : > { %2584 = vmatprep.subr.bf16.mxu0 %v2825_v26 }
 0x605   : > { %2585 = vmatpush3.bf16.msra.mxu0 %v1782_v15 }
 0x606   : > { %2586 = vmatprep.subr.bf16.mxu0 %v2825_v26 }
 0x609   : > { %2587 = vmatpush3.bf16.msra.mxu0 %v1781_v42  ;;  %v2004_v42 = vld [vmem:[%s3830_s11 + $0x20] sm:$0xff] }
 0x60a   : > { %2588 = vmatprep.subr.bf16.mxu0 %v2825_v26  ;;  %v2010_v46 = vpack.c.bf16 %v2005_v19, %v2004_v42 }
 0x60d   : > { %2589 = vmatpush3.bf16.msra.mxu0 %v1780_v48  ;;  %v2003_v48 = vld [vmem:[%s3830_s11 + $0x18] sm:$0xff] }
 0x69e   : > { %v2568_v0 = vpop.f32.mrf.mxu1 }
 0x69f   : > { %1869 = vrot.lane.b32.xlu0 %v2568_v0, %s2832_s24 }
 0x6a0   : > { %v1836_v28 = vpop.f32.mrf.mxu1 }
 0x6a2   : > { %v2569_v52 = vpop.f32.mrf.mxu1 }
 0x6a3   : > { %1871 = vrot.lane.b32.xlu1 %v2569_v52, %s2832_s24  ;;  %v2006_v52 = vld [vmem:[%s3830_s11 + $0x30] sm:$0xff] }
 0x6a4   : > { %v1839_v40 = vpop.f32.mrf.mxu1  ;;  %v2011_v14 = vpack.c.bf16 %v2007_v2, %v2006_v52 }
 0x6aa   : > { %v2572_v10 = vpop.f32.mrf.mxu1 }
 0x6ac   : > { %v1852_v17 = vpop.f32.mrf.mxu1 }
 0x6ad   : > { %1877 = vrot.lane.b32.xlu0 %v1852_v17, %s2833_s23 }
 0x6ae   : > { %v2573_v4 = vpop.f32.mrf.mxu1 }
 0x6b0   : > { %v1855_v16 = vpop.f32.mrf.mxu1 }
 0x6b1   : > { %1885 = vrot.lane.b32.xlu0 %v2572_v10, %s2834_s25  ;;  %1879 = vrot.lane.b32.xlu1 %v1855_v16, %s2833_s23  ;;  %v2043_v16 = vld [vmem:[%s3831_s12 + $0xf8] sm:$0xff] }
 0x6b2   : > { %v1981_v25 = vpop.f32.mrf.mxu1 }
 0x6b4   : > { %v2600_v43 = vpop.f32.mrf.mxu1 }
 0x6b5   : > { %1887 = vrot.lane.b32.xlu1 %v2573_v4, %s2834_s25  ;;  %v2042_v4 = vld [vmem:[%s3831_s12 + $0xf0] sm:$0xff]  ;;  %v2040_v43 = vld [vmem:[%s3831_s12 + $0xe0] sm:$0xff] }
 0x6b6   : > { %v1984_v45 = vpop.f32.mrf.mxu1 }
 0x6b8   : > { %v2601_v22 = vpop.f32.mrf.mxu1 }
 0x711   : > { %v1870_v8 = vpop.permute.xlu0 %1869 }
 0x712   : > { %v1892_v62 = vsel %vm1891_vm9, %v1836_v28, %v1870_v8 }
 0x715   : > { %v1872_v37 = vpop.permute.xlu1 %1871 }
 0x716   : > { %v1893_v7 = vsel %vm1891_vm9, %v1839_v40, %v1872_v37  ;;  %v2002_v40 = vld [vmem:[%s3830_s11 + $0x10] sm:$0xff]  ;;  %v2024_v37 = vld [vmem:[%s3831_s12 + $0x60] sm:$0xff] }
 0x717   : > { %v2009_v10 = vpack.c.bf16 %v2003_v48, %v2002_v40 }
 0x71f   : > { %v1878_v31 = vpop.permute.xlu0 %1877 }
 0x720   : > { %v1895_v23 = vsel %vm1894_vm10, %v1892_v62, %v1878_v31  ;;  %v2025_v31 = vld [vmem:[%s3831_s12 + $0x68] sm:$0xff] }
 0x721   : > { %v2050_v62 = vpack.c.bf16 %v2025_v31, %v2024_v37 }
 0x723   : > { %v1886_v50 = vpop.permute.xlu0 %1885  ;;  %v1880_v51 = vpop.permute.xlu1 %1879 }
 0x724   : > { %v1898_v53 = vsel %vm1897_vm11, %v1895_v23, %v1886_v50  ;;  %v1896_v18 = vsel %vm1894_vm10, %v1893_v7, %v1880_v51  ;;  %v2038_v50 = vld [vmem:[%s3831_s12 + $0xd0] sm:$0xff]  ;;  %v2039_v51 = vld [vmem:[%s3831_s12 + $0xd8] sm:$0xff] }
 0x725   : > { %v1900_v57 = vmul.f32 0.125, %v1898_v53  ;;  %v2057_v23 = vpack.c.bf16 %v2039_v51, %v2038_v50  ;;  %v2022_v7 = vld [vmem:[%s3831_s12 + $0x50] sm:$0xff]  ;;  %v2023_v53 = vld [vmem:[%s3831_s12 + $0x58] sm:$0xff] }
 0x727   : > { %v1888_v36 = vpop.permute.xlu1 %1887 }
 0x728   : > { %v1899_v56 = vsel %vm1897_vm11, %v1896_v18, %v1888_v36  ;;  %v2036_v18 = vld [vmem:[%s3831_s12 + $0xc0] sm:$0xff]  ;;  %v2037_v36 = vld [vmem:[%s3831_s12 + $0xc8] sm:$0xff] }
 0x729   : > { %v1901_v13 = vmul.f32 0.125, %v1899_v56  ;;  %v2049_v56 = vpack.c.bf16 %v2023_v53, %v2022_v7 }
 0x72b   : > { %v1902_v59 = vpack.c.bf16 %v1901_v13, %v1900_v57  ;;  %v2056_v57 = vpack.c.bf16 %v2037_v36, %v2036_v18  ;;  %v2020_v13 = vld [vmem:[%s3831_s12 + $0x40] sm:$0xff] }
 0x72d   : > { %2591 = vmatmul.mubr.bf16.vlgmr.msra.gmra.mxu0 %v1902_v59  ;;  %v2021_v59 = vld [vmem:[%s3831_s12 + $0x48] sm:$0xff] }
 0x7ed   : > { %v1937_v6 = vpop.f32.mrf.mxu0 }
 0x7ee   : > { %v1982_v41 = vadd.f32 %v1981_v25, %v1937_v6  ;;  %v2059_v25 = vpack.c.bf16 %v2043_v16, %v2042_v4  ;;  %v2035_v6 = vld [vmem:[%s3831_s12 + $0xb8] sm:$0xff] }
 0x7ef   : > { %v2592_v33 = vpop.f32.mrf.mxu0 }
 0x7f0   : > { %v1994_v24 = vadd.f32 %v2414_v35, %v1982_v41  ;;  %2477 = vmatprep.subr.bf16.mxu0 %v2059_v25  ;;  %v2048_v41 = vpack.c.bf16 %v2021_v59, %v2020_v13 }
 0x7f1   : > { %v1940_v55 = vpop.f32.mrf.mxu0 }
 0x7f2   : > { %v1996_v60 = vmax.f32 %v1994_v24, 0.0  ;;  %v1985_v61 = vadd.f32 %v1984_v45, %v1940_v55  ;;  %v2041_v45 = vld [vmem:[%s3831_s12 + $0xe8] sm:$0xff]  ;;  %v2018_v24 = vld [vmem:[%s3831_s12 + $0x30] sm:$0xff]  ;;  %v2019_v55 = vld [vmem:[%s3831_s12 + $0x38] sm:$0xff] }
 0x7f3   : > { %v2593_v47 = vpop.f32.mrf.mxu0  ;;  %v2058_v8 = vpack.c.bf16 %v2041_v45, %v2040_v43 }
 0x7f4   : > { %v1995_v27 = vadd.f32 %v2414_v35, %v1985_v61  ;;  %v1998_v39 = vadd.f32 %v1996_v60, %v1756_v20  ;;  %v2034_v35 = vld [vmem:[%s3831_s12 + $0xb0] sm:$0xff]  ;;  %v2047_v60 = vpack.c.bf16 %v2019_v55, %v2018_v24  ;;  %v2032_v61 = vld [vmem:[%s3831_s12 + $0xa0] sm:$0xff]  ;;  %v2033_v47 = vld [vmem:[%s3831_s12 + $0xa8] sm:$0xff] }
 0x7f5   : > { %v2055_v33 = vpack.c.bf16 %v2035_v6, %v2034_v35 }
 0x7f6   : > { %v1997_v34 = vmax.f32 %v1995_v27, 0.0  ;;  %v2061_v11 = vsel %vm1891_vm9, %v1998_v39, -inf  ;;  %v2054_v27 = vpack.c.bf16 %v2033_v47, %v2032_v61 }
 0x7f8   : > { %v1999_v1 = vadd.f32 %v1997_v34, %v1757_v12  ;;  %v2017_v34 = vld [vmem:[%s3831_s12 + $0x28] sm:$0xff] }
 0x7fa   : > { %v2747_v3 = vpack.i.bf16 %v1999_v1, %v1998_v39  ;;  %v2062_v54 = vsel %vm1891_vm9, %v1999_v1, -inf  ;;  %v2016_v39 = vld [vmem:[%s3831_s12 + $0x20] sm:$0xff] }
 0x7fb   : > { %v2063_v38 = vmax.f32 %v2061_v11, %v2062_v54  ;;  %v2046_v1 = vpack.c.bf16 %v2017_v34, %v2016_v39  ;;  %v2030_v11 = vld [vmem:[%s3831_s12 + $0x90] sm:$0xff] }
 0x7fc   : > { %2748 = vrot.lane.b32.xlu0 %v2747_v3, %s2832_s24  ;;  %v2031_v3 = vld [vmem:[%s3831_s12 + $0x98] sm:$0xff]  ;;  %s2425_s24 = sshll.u32 %s3835_s30, 5 }
 0x7fd   : > { %v2064_v21 = vrot.slane %v2063_v38, 4  ;;  %v2053_v54 = vpack.c.bf16 %v2031_v3, %v2030_v11  ;;  %s487_s19 = scalar_lea.vmem %s3833_s14, %s2425_s24 }
 0x7ff   : > { %v2065_v5 = vmax.f32 %v2063_v38, %v2064_v21  ;;  %v2014_v38 = vld [vmem:[%s3831_s12 + $0x10] sm:$0xff]  ;;  %v2015_v21 = vld [vmem:[%s3831_s12 + $0x18] sm:$0xff] }
 0x801   : > { %v2066_v29 = vrot.slane %v2065_v5, 2 }
 0x803   : > { %v2067_v0 = vmax.f32 %v2065_v5, %v2066_v29  ;;  %v2045_v29 = vpack.c.bf16 %v2015_v21, %v2014_v38 }
 0x805   : > { %v2068_v49 = vrot.slane %v2067_v0, 1 }
 0x807   : > { %v2069_v28 = vmax.f32 %v2067_v0, %v2068_v49  ;;  %v2028_v49 = vld [vmem:[%s3831_s12 + $0x80] sm:$0xff] }
 0x86e   : > { %v2749_v30 = vpop.permute.xlu0 %2748 }
 0x86f   : > { %v2751_v63 = vunpack.i.h.bf16 %v2749_v30  ;;  %v2750_v20 = vunpack.i.l.bf16 %v2749_v30  ;;  %v2029_v30 = vld [vmem:[%s3831_s12 + $0x88] sm:$0xff] }
 0x871   : > { %v2078_v9 = vsel %vm1891_vm9, %v2069_v28, %v2750_v20  ;;  %v2079_v12 = vsel %vm1891_vm9, %v2069_v28, %v2751_v63  ;;  %v2052_v63 = vpack.c.bf16 %v2029_v30, %v2028_v49  ;;  %v2012_v20 = vld [vmem:[%s3831_s12] sm:$0xff]  ;;  %v2013_v28 = vld [vmem:[%s3831_s12 + $0x8] sm:$0xff] }
 0x872   : > { %v2080_v15 = vpack.c.bf16 %v2079_v12, %v2078_v9  ;;  %v2044_v12 = vpack.c.bf16 %v2013_v28, %v2012_v20 }
 0x874   : > { %2602 = vmatprep.subr.bf16.mxu1 %v2080_v15 }
 0x875   : > { %2603 = vmatpush3.bf16.msra.mxu1 %v2080_v15 }
 0x876   : > { %2612 = vmatprep.subr.bf16.mxu1 %v2825_v26 }
 0x878   : > { %2605 = vmatmul.mubr.msk.bf16.vlgmr.msra.gmra.mxu1 %vm605_vm4, %v3554_v44  ;;  %v2000_v44 = vld [vmem:[%s3830_s11] sm:$0xff] }
 0x879   : > { %2608 = vmatprep.mubr.msk.bf16.mxu1 %vm605_vm4, %v3575_v58  ;;  %2613 = vmatpush3.bf16.msra.mxu1 %v2011_v14  ;;  %v2001_v58 = vld [vmem:[%s3830_s11 + $0x8] sm:$0xff] }
 0x87a   : > { %2614 = vmatprep.subr.bf16.mxu1 %v2825_v26  ;;  %v2008_v17 = vpack.c.bf16 %v2001_v58, %v2000_v44 }
 0x87d   : > { %2615 = vmatpush3.bf16.msra.mxu1 %v2010_v46 }
 0x87e   : > { %2616 = vmatprep.subr.bf16.mxu1 %v2825_v26 }
 0x880   : > { %2609 = vmatmul.mubr.msk.bf16.gmra.mxu1 %vm605_vm4, %v3579_v32  ;;  %v2026_v32 = vld [vmem:[%s3831_s12 + $0x70] sm:$0xff] }
 0x881   : > { %2617 = vmatpush3.bf16.msra.mxu1 %v2009_v10  ;;  %2620 = vmatprep.mubr.msk.bf16.mxu1 %vm2829_vm8, %v2825_v26 }
 0x882   : > { %2618 = vmatprep.subr.bf16.mxu1 %v2825_v26  ;;  %v2027_v26 = vld [vmem:[%s3831_s12 + $0x78] sm:$0xff] }
 0x883   : > { %v2051_v22 = vpack.c.bf16 %v2027_v26, %v2026_v32 }
 0x885   : > { %2619 = vmatpush3.bf16.msra.mxu1 %v2008_v17  ;;  %2478 = vmatpush3.bf16.msra.mxu0 %v2051_v22 }
 0x886   : > { %2479 = vmatprep.subr.bf16.mxu0 %v2058_v8 }
 0x888   : > { %2621 = vmatmul.mubr.msk.bf16.vlgmr.msra.gmra.mxu1 %vm1894_vm10, %v2080_v15 }
 0x889   : > { %2480 = vmatpush3.bf16.msra.mxu0 %v2050_v62  ;;  %v2420_v62 = vld [vmem:[%s3832_s13] ss:$0 sm:$0xff] }
 0x88a   : > { %2481 = vmatprep.subr.bf16.mxu0 %v2057_v23 }
 0x88d   : > { %2482 = vmatpush3.bf16.msra.mxu0 %v2049_v56 }
 0x88e   : > { %2483 = vmatprep.subr.bf16.mxu0 %v2056_v57 }
 0x891   : > { %2484 = vmatpush3.bf16.msra.mxu0 %v2048_v41 }
 0x892   : > { %2485 = vmatprep.subr.bf16.mxu0 %v2055_v33 }
 0x895   : > { %2486 = vmatpush3.bf16.msra.mxu0 %v2047_v60 }
 0x896   : > { %2487 = vmatprep.subr.bf16.mxu0 %v2054_v27 }
 0x899   : > { %2488 = vmatpush3.bf16.msra.mxu0 %v2046_v1 }
 0x89a   : > { %2489 = vmatprep.subr.bf16.mxu0 %v2053_v54 }
 0x89d   : > { %2490 = vmatpush3.bf16.msra.mxu0 %v2045_v29 }
 0x89e   : > { %2491 = vmatprep.subr.bf16.mxu0 %v2052_v63 }
 0x8a1   : > { %2492 = vmatpush3.bf16.msra.mxu0 %v2044_v12 }
 0x938   : > { %v2606_v5 = vpop.f32.mrf.mxu1 }
 0x93a   : > { %v2115_v0 = vpop.f32.mrf.mxu1 }
 0x93c   : > { %v2607_v9 = vpop.f32.mrf.mxu1 }
 0x93e   : > { %v2118_v15 = vpop.f32.mrf.mxu1 }
 0x940   : > { %v2610_v52 = vpop.f32.mrf.mxu1 }
 0x941   : > { %2156 = vrot.lane.b32.xlu1 %v2610_v52, %s2833_s23 }
 0x942   : > { %v2131_v2 = vpop.f32.mrf.mxu1 }
 0x944   : > { %v2611_v14 = vpop.f32.mrf.mxu1 }
 0x945   : > { %2148 = vrot.lane.b32.xlu1 %v2606_v5, %s2833_s23  ;;  %2158 = vrot.lane.b32.xlu0 %v2611_v14, %s2833_s23 }
 0x946   : > { %v2134_v42 = vpop.f32.mrf.mxu1 }
 0x948   : > { %v2250_v19 = vpop.f32.mrf.mxu1 }
 0x949   : > { %2150 = vrot.lane.b32.xlu0 %v2607_v9, %s2833_s23 }
 0x94a   : > { %v2622_v46 = vpop.f32.mrf.mxu1 }
 0x94c   : > { %v2253_v40 = vpop.f32.mrf.mxu1 }
 0x94e   : > { %v2623_v48 = vpop.f32.mrf.mxu1 }
 0x9b3   : > { %v2157_v10 = vpop.permute.xlu1 %2156 }
 0x9b4   : > { %v2164_v44 = vsel %vm1894_vm10, %v2131_v2, %v2157_v10 }
 0x9b5   : > { %v2167_v16 = vmul.f32 0.125, %v2164_v44 }
 0x9b7   : > { %v2149_v58 = vpop.permute.xlu1 %2148  ;;  %v2159_v17 = vpop.permute.xlu0 %2158 }
 0x9b8   : > { %v2165_v4 = vsel %vm1894_vm10, %v2134_v42, %v2159_v17  ;;  %v2162_v25 = vsel %vm1894_vm10, %v2115_v0, %v2149_v58 }
 0x9b9   : > { %v2169_v32 = vmul.f32 0.125, %v2165_v4  ;;  %v2166_v22 = vmul.f32 0.125, %v2162_v25 }
 0x9bb   : > { %v2151_v26 = vpop.permute.xlu0 %2150  ;;  %v2171_v43 = vpack.c.bf16 %v2169_v32, %v2167_v16 }
 0x9bc   : > { %v2163_v45 = vsel %vm1894_vm10, %v2118_v15, %v2151_v26 }
 0x9bd   : > { %v2168_v8 = vmul.f32 0.125, %v2163_v45  ;;  %2204 = vmatprep.mubr.bf16.mxu0 %v2171_v43 }
 0x9bf   : > { %v2170_v37 = vpack.c.bf16 %v2168_v8, %v2166_v22 }
 0x9c1   : > { %2205 = vmatmul.mubr.bf16.vlgmr.msra.gmra.mxu0 %v2170_v37 }
 0xa81   : > { %v2493_v31 = vpop.f32.mrf.mxu0 }
 0xa83   : > { %v2494_v50 = vpop.f32.mrf.mxu0 }
 0xa84   : > { %v2495_v51 = vadd.f32 %v2494_v50, %v2493_v31 }
 0xa85   : > { %v2496_v23 = vpop.f32.mrf.mxu0 }
 0xa86   : > { %v2251_v7 = vadd.f32 %v2495_v51, %v2250_v19 }
 0xa87   : > { %v2497_v53 = vpop.f32.mrf.mxu0 }
 0xa88   : > { %v2263_v18 = vadd.f32 %v2420_v62, %v2251_v7  ;;  %v2498_v36 = vadd.f32 %v2497_v53, %v2496_v23 }
 0xa8a   : > { %v2265_v56 = vmax.f32 %v2263_v18, 0.0  ;;  %v2254_v57 = vadd.f32 %v2498_v36, %v2253_v40 }
 0xa8c   : > { %v2264_v13 = vadd.f32 %v2420_v62, %v2254_v57  ;;  %2267 = vxpose.xlu1.b32.start [1/2] (short) (narrow) %v2265_v56, 32 }
 0xa8e   : > { %v2266_v59 = vmax.f32 %v2264_v13, 0.0 }
 0xa90   : > { %2268 = vxpose.xlu1.b32.end [2/2] (short) (narrow) %v2266_v59, 32 }
 0xb08   : > { %v2283_v35 = vpop.trf.xlu1 }
 0xb09   : > { %2299 = vst.msk [vmem:[%s487_s19] sm:$0xff] %vm605_vm4, %v2283_v35 }
 0xb0c   : > { %v2284_v6 = vpop.trf.xlu1 }
 0xb0d   : > { %2300 = vst.msk [vmem:[%s487_s19 + $0x8] sm:$0xff] %vm605_vm4, %v2284_v6 }
 0xb10   : > { %v2285_v41 = vpop.trf.xlu1 }
 0xb11   : > { %2301 = vst.msk [vmem:[%s487_s19 + $0x10] sm:$0xff] %vm605_vm4, %v2285_v41 }
 0xb14   : > { %v2286_v33 = vpop.trf.xlu1 }
 0xb15   : > { %2302 = vst.msk [vmem:[%s487_s19 + $0x18] sm:$0xff] %vm605_vm4, %v2286_v33 }
 0xb16 PF: > { %s24_s29 = sadd.s32 1, %s2822_s29  }
 0xb17   : > { %p21_p4 = scmp.ge.s32.totalorder %s24_s29, 4  }
 0xb19   :  { %23 = sbr.rel (!%p21_p4) target bundleno = 1 (0x1), region = 109 }

</bundles_post_ra>
